<compile_context>
chip_gen: v5e
topology: v5e:2x2
jax: 0.10.0
libtpu: 0.0.40
codegen_flags: <defaults>
</compile_context>

<pallas_src>
import functools

import jax
import jax.numpy as jnp
from jax.experimental import pallas as pl
from jax.experimental.pallas import tpu as pltpu


def _round_up(x, m):
    return ((x + m - 1) // m) * m


def _choose_block_b(batch):
    """Rows per grid step: <=64 (cheap per-row DMAs, many in flight) and
    guaranteeing >=2 grid blocks once the batch exceeds one tile (v7x megacore
    sharding + output-writeback pipelining)."""
    b_need = _round_up(max(batch, 1), 8)
    if b_need <= 8:
        return 8
    return min(64, _round_up(-(-b_need // 2), 8))


def _complex_gather_kernel(s_idx_ref, r_idx_ref, o_idx_ref,      # SMEM (scalar prefetch)
                           e_tbl_ref, r_tbl_ref,                 # HBM tables (pl.ANY)
                           out_ref,                              # VMEM (block_b, 1)
                           s_buf, r_buf, o_buf, sem,             # scratch
                           *, block_b, emb_dim, clamp_v):
    base = pl.program_id(0) * block_b

    def row_copies(j):
        s_row = pltpu.make_async_copy(
            e_tbl_ref.at[pl.ds(s_idx_ref[base + j], 1)], s_buf.at[pl.ds(j, 1)], sem.at[0])
        r_row = pltpu.make_async_copy(
            r_tbl_ref.at[pl.ds(r_idx_ref[base + j], 1)], r_buf.at[pl.ds(j, 1)], sem.at[1])
        o_row = pltpu.make_async_copy(
            e_tbl_ref.at[pl.ds(o_idx_ref[base + j], 1)], o_buf.at[pl.ds(j, 1)], sem.at[2])
        return s_row, r_row, o_row

    # Issue every row DMA first (3*block_b gathers in flight), then wait.
    for j in range(block_b):
        for cp in row_copies(j):
            cp.start()
    for j in range(block_b):
        for cp in row_copies(j):
            cp.wait()

    d = emb_dim

    def split(buf):
        rows = buf[...].astype(jnp.float32)
        if clamp_v:                       # matches torch's `if self.clamp_v:`
            rows = jnp.clip(rows, -clamp_v, clamp_v)
        return rows[:, :d], rows[:, d:]

    s_re, s_im = split(s_buf)
    r_re, r_im = split(r_buf)
    o_re, o_im = split(o_buf)

    score = (s_re * o_re + s_im * o_im) * r_re + (s_re * o_im - s_im * o_re) * r_im
    out_ref[...] = jnp.sum(score, axis=-1, keepdims=True)


def complex_score(params, s, r, o, *, clamp_v=None):
    """ComplEx forward for index tensors s, r, o of shape (B,). Returns (B,)."""
    e_tbl, r_tbl = params["E"], params["R"]
    two_d = e_tbl.shape[1]
    emb_dim = two_d // 2
    batch = s.shape[0]

    block_b = _choose_block_b(batch)
    num_blocks = -(-batch // block_b)
    b_pad = num_blocks * block_b

    # Ragged batch: pad index vectors with 0 (always a valid row); padded
    # output rows are sliced off below.
    def _pad_idx(idx):
        idx = idx.astype(jnp.int32)
        pad = b_pad - idx.shape[0]
        if pad:
            idx = jnp.concatenate([idx, jnp.zeros((pad,), jnp.int32)])
        return idx

    s_p, r_p, o_p = _pad_idx(s), _pad_idx(r), _pad_idx(o)

    kernel = functools.partial(_complex_gather_kernel, block_b=block_b,
                               emb_dim=emb_dim, clamp_v=clamp_v)

    itemsize = jnp.dtype(e_tbl.dtype).itemsize
    scratch_bytes = 3 * block_b * two_d * itemsize
    # Small footprint now; keep an explicit ceiling comfortably under v7x's
    # 64 MiB per-core VMEM.
    vmem_limit = int(min(48 << 20, max(16 << 20, scratch_bytes + (8 << 20))))

    out = pl.pallas_call(
        kernel,
        out_shape=jax.ShapeDtypeStruct((b_pad, 1), jnp.float32),
        grid_spec=pltpu.PrefetchScalarGridSpec(
            num_scalar_prefetch=3,
            grid=(num_blocks,),
            in_specs=[pl.BlockSpec(memory_space=pl.ANY),    # E table, stays in HBM
                      pl.BlockSpec(memory_space=pl.ANY)],   # R table, stays in HBM
            out_specs=pl.BlockSpec((block_b, 1), lambda i, s_i, r_i, o_i: (i, 0)),
            scratch_shapes=[
                pltpu.VMEM((block_b, two_d), e_tbl.dtype),   # gathered s rows
                pltpu.VMEM((block_b, two_d), r_tbl.dtype),   # gathered r rows
                pltpu.VMEM((block_b, two_d), e_tbl.dtype),   # gathered o rows
                pltpu.SemaphoreType.DMA((3,)),
            ],
        ),
        compiler_params=pltpu.CompilerParams(
            dimension_semantics=("parallel",),
            vmem_limit_bytes=vmem_limit,
        ),
    )(s_p, r_p, o_p, e_tbl, r_tbl)
    return out[:batch, 0]


def init_params(key, entity_count, relation_count, embedding_dim):
    """Tables are stored concatenated [re ‖ im] so the kernel gathers one row
    per role instead of two (3 DMAs per triple instead of 6)."""
    k1, k2, k3, k4 = jax.random.split(key, 4)
    std = 0.05
    e_re = std * jax.random.normal(k1, (entity_count, embedding_dim), jnp.float32)
    e_im = std * jax.random.normal(k2, (entity_count, embedding_dim), jnp.float32)
    r_re = std * jax.random.normal(k3, (relation_count, embedding_dim), jnp.float32)
    r_im = std * jax.random.normal(k4, (relation_count, embedding_dim), jnp.float32)
    return {
        "E": jnp.concatenate([e_re, e_im], axis=1),
        "R": jnp.concatenate([r_re, r_im], axis=1),
    }


def _reference_score(params, s, r, o, clamp_v=None):
    d = params["E"].shape[1] // 2
    e_re, e_im = params["E"][:, :d], params["E"][:, d:]
    rt_re, rt_im = params["R"][:, :d], params["R"][:, d:]
    s_re, s_im = e_re[s], e_im[s]
    o_re, o_im = e_re[o], e_im[o]
    r_re, r_im = rt_re[r], rt_im[r]
    if clamp_v:
        clip = lambda x: jnp.clip(x, -clamp_v, clamp_v)
        s_re, s_im, r_re, r_im, o_re, o_im = map(
            clip, (s_re, s_im, r_re, r_im, o_re, o_im))
    res = (s_re * o_re + s_im * o_im) * r_re + (s_re * o_im - s_im * o_re) * r_im
    return res.sum(axis=-1)


if __name__ == "__main__":
    key = jax.random.PRNGKey(0)

    # --- case 1: small, ragged batch (B not a multiple of 8), tiny D ---------
    entity_count, relation_count, embedding_dim, batch = 100, 20, 32, 10
    kp, ks, kr, ko, key = jax.random.split(key, 5)
    params = init_params(kp, entity_count, relation_count, embedding_dim)
    s = jax.random.randint(ks, (batch,), 0, entity_count, dtype=jnp.int32)
    r = jax.random.randint(kr, (batch,), 0, relation_count, dtype=jnp.int32)
    o = jax.random.randint(ko, (batch,), 0, entity_count, dtype=jnp.int32)

    scores = complex_score(params, s, r, o)
    jax.block_until_ready(scores)
    ref = _reference_score(params, s, r, o)
    assert scores.shape == (batch,)
    assert jnp.allclose(scores, ref, atol=1e-5, rtol=1e-5)

    # --- case 2: larger ragged batch, D multiple of 128, clamp enabled -------
    entity_count, relation_count, embedding_dim, batch = 200, 30, 256, 300
    kp, ks, kr, ko, key = jax.random.split(key, 5)
    params = init_params(kp, entity_count, relation_count, embedding_dim)
    s = jax.random.randint(ks, (batch,), 0, entity_count, dtype=jnp.int32)
    r = jax.random.randint(kr, (batch,), 0, relation_count, dtype=jnp.int32)
    o = jax.random.randint(ko, (batch,), 0, entity_count, dtype=jnp.int32)

    scores2 = complex_score(params, s, r, o, clamp_v=0.05)
    jax.block_until_ready(scores2)
    ref2 = _reference_score(params, s, r, o, clamp_v=0.05)
    assert scores2.shape == (batch,)
    assert jnp.allclose(scores2, ref2, atol=1e-5, rtol=1e-5)

    print("KERNEL_OK")
</pallas_src>

<mosaic_0001>
module attributes {stable_mosaic.version = 11 : i64} {
  func.func @_complex_gather_kernel(%arg0: i32, %arg1: memref<16xi32, #tpu.memory_space<smem>>, %arg2: memref<16xi32, #tpu.memory_space<smem>>, %arg3: memref<16xi32, #tpu.memory_space<smem>>, %arg4: memref<100x64xf32, #tpu.memory_space<any>>, %arg5: memref<20x64xf32, #tpu.memory_space<any>>, %arg6: memref<8x1xf32, #tpu.memory_space<vmem>>, %arg7: memref<8x64xf32, #tpu.memory_space<vmem>>, %arg8: memref<8x64xf32, #tpu.memory_space<vmem>>, %arg9: memref<8x64xf32, #tpu.memory_space<vmem>>, %arg10: memref<3x!tpu.dma_semaphore, #tpu.memory_space<semaphore_mem>>) attributes {dimension_semantics = [#tpu.dimension_semantics<parallel>], iteration_bounds = array<i64: 2>, scalar_prefetch = 3 : i64, scratch_operands = 4 : i64, tpu.core_type = #tpu.core_type<tc>, window_params = [{}, {}, {transform_indices = @transform_2, window_bounds = array<i64: 8, 1>}]} {
    %c8_i32 = arith.constant 8 : i32
    %0 = arith.muli %arg0, %c8_i32 : i32
    %c0_i32 = arith.constant 0 : i32
    %1 = arith.addi %0, %c0_i32 : i32
    %2 = arith.index_cast %1 : i32 to index
    %3 = memref.load %arg1[%2] : memref<16xi32, #tpu.memory_space<smem>>
    %c0_i32_0 = arith.constant 0 : i32
    %4 = arith.addi %0, %c0_i32_0 : i32
    %5 = arith.index_cast %4 : i32 to index
    %6 = memref.load %arg2[%5] : memref<16xi32, #tpu.memory_space<smem>>
    %c0_i32_1 = arith.constant 0 : i32
    %7 = arith.addi %0, %c0_i32_1 : i32
    %8 = arith.index_cast %7 : i32 to index
    %9 = memref.load %arg3[%8] : memref<16xi32, #tpu.memory_space<smem>>
    %c0_i32_2 = arith.constant 0 : i32
    %c0_i32_3 = arith.constant 0 : i32
    %10 = tpu.memref_slice %arg4[%3, %c0_i32_3] : memref<100x64xf32, #tpu.memory_space<any>> -> memref<1x64xf32, #tpu.memory_space<any>>
    %c0_i32_4 = arith.constant 0 : i32
    %c0_i32_5 = arith.constant 0 : i32
    %11 = tpu.memref_slice %arg7[%c0_i32_4, %c0_i32_5] : memref<8x64xf32, #tpu.memory_space<vmem>> -> memref<1x64xf32, #tpu.memory_space<vmem>>
    %12 = tpu.memref_slice %arg10[%c0_i32_2] : memref<3x!tpu.dma_semaphore, #tpu.memory_space<semaphore_mem>> -> memref<1x!tpu.dma_semaphore, #tpu.memory_space<semaphore_mem>>
    %13 = tpu.memref_squeeze %12 : memref<1x!tpu.dma_semaphore, #tpu.memory_space<semaphore_mem>> -> memref<!tpu.dma_semaphore, #tpu.memory_space<semaphore_mem>>
    tpu.enqueue_dma source(%10 : memref<1x64xf32, #tpu.memory_space<any>>) target(%11 : memref<1x64xf32, #tpu.memory_space<vmem>>) target_semaphore(%13 : memref<!tpu.dma_semaphore, #tpu.memory_space<semaphore_mem>>)
    %c1_i32 = arith.constant 1 : i32
    %c0_i32_6 = arith.constant 0 : i32
    %14 = tpu.memref_slice %arg5[%6, %c0_i32_6] : memref<20x64xf32, #tpu.memory_space<any>> -> memref<1x64xf32, #tpu.memory_space<any>>
    %c0_i32_7 = arith.constant 0 : i32
    %c0_i32_8 = arith.constant 0 : i32
    %15 = tpu.memref_slice %arg8[%c0_i32_7, %c0_i32_8] : memref<8x64xf32, #tpu.memory_space<vmem>> -> memref<1x64xf32, #tpu.memory_space<vmem>>
    %16 = tpu.memref_slice %arg10[%c1_i32] : memref<3x!tpu.dma_semaphore, #tpu.memory_space<semaphore_mem>> -> memref<1x!tpu.dma_semaphore, #tpu.memory_space<semaphore_mem>>
    %17 = tpu.memref_squeeze %16 : memref<1x!tpu.dma_semaphore, #tpu.memory_space<semaphore_mem>> -> memref<!tpu.dma_semaphore, #tpu.memory_space<semaphore_mem>>
    tpu.enqueue_dma source(%14 : memref<1x64xf32, #tpu.memory_space<any>>) target(%15 : memref<1x64xf32, #tpu.memory_space<vmem>>) target_semaphore(%17 : memref<!tpu.dma_semaphore, #tpu.memory_space<semaphore_mem>>)
    %c2_i32 = arith.constant 2 : i32
    %c0_i32_9 = arith.constant 0 : i32
    %18 = tpu.memref_slice %arg4[%9, %c0_i32_9] : memref<100x64xf32, #tpu.memory_space<any>> -> memref<1x64xf32, #tpu.memory_space<any>>
    %c0_i32_10 = arith.constant 0 : i32
    %c0_i32_11 = arith.constant 0 : i32
    %19 = tpu.memref_slice %arg9[%c0_i32_10, %c0_i32_11] : memref<8x64xf32, #tpu.memory_space<vmem>> -> memref<1x64xf32, #tpu.memory_space<vmem>>
    %20 = tpu.memref_slice %arg10[%c2_i32] : memref<3x!tpu.dma_semaphore, #tpu.memory_space<semaphore_mem>> -> memref<1x!tpu.dma_semaphore, #tpu.memory_space<semaphore_mem>>
    %21 = tpu.memref_squeeze %20 : memref<1x!tpu.dma_semaphore, #tpu.memory_space<semaphore_mem>> -> memref<!tpu.dma_semaphore, #tpu.memory_space<semaphore_mem>>
    tpu.enqueue_dma source(%18 : memref<1x64xf32, #tpu.memory_space<any>>) target(%19 : memref<1x64xf32, #tpu.memory_space<vmem>>) target_semaphore(%21 : memref<!tpu.dma_semaphore, #tpu.memory_space<semaphore_mem>>)
    %c1_i32_12 = arith.constant 1 : i32
    %22 = arith.addi %0, %c1_i32_12 : i32
    %23 = arith.index_cast %22 : i32 to index
    %24 = memref.load %arg1[%23] : memref<16xi32, #tpu.memory_space<smem>>
    %c1_i32_13 = arith.constant 1 : i32
    %25 = arith.addi %0, %c1_i32_13 : i32
    %26 = arith.index_cast %25 : i32 to index
    %27 = memref.load %arg2[%26] : memref<16xi32, #tpu.memory_space<smem>>
    %c1_i32_14 = arith.constant 1 : i32
    %28 = arith.addi %0, %c1_i32_14 : i32
    %29 = arith.index_cast %28 : i32 to index
    %30 = memref.load %arg3[%29] : memref<16xi32, #tpu.memory_space<smem>>
    %c0_i32_15 = arith.constant 0 : i32
    %c0_i32_16 = arith.constant 0 : i32
    %31 = tpu.memref_slice %arg4[%24, %c0_i32_16] : memref<100x64xf32, #tpu.memory_space<any>> -> memref<1x64xf32, #tpu.memory_space<any>>
    %c1_i32_17 = arith.constant 1 : i32
    %c0_i32_18 = arith.constant 0 : i32
    %32 = tpu.memref_slice %arg7[%c1_i32_17, %c0_i32_18] : memref<8x64xf32, #tpu.memory_space<vmem>> -> memref<1x64xf32, #tpu.memory_space<vmem>>
    %33 = tpu.memref_slice %arg10[%c0_i32_15] : memref<3x!tpu.dma_semaphore, #tpu.memory_space<semaphore_mem>> -> memref<1x!tpu.dma_semaphore, #tpu.memory_space<semaphore_mem>>
    %34 = tpu.memref_squeeze %33 : memref<1x!tpu.dma_semaphore, #tpu.memory_space<semaphore_mem>> -> memref<!tpu.dma_semaphore, #tpu.memory_space<semaphore_mem>>
    tpu.enqueue_dma source(%31 : memref<1x64xf32, #tpu.memory_space<any>>) target(%32 : memref<1x64xf32, #tpu.memory_space<vmem>>) target_semaphore(%34 : memref<!tpu.dma_semaphore, #tpu.memory_space<semaphore_mem>>)
    %c1_i32_19 = arith.constant 1 : i32
    %c0_i32_20 = arith.constant 0 : i32
    %35 = tpu.memref_slice %arg5[%27, %c0_i32_20] : memref<20x64xf32, #tpu.memory_space<any>> -> memref<1x64xf32, #tpu.memory_space<any>>
    %c1_i32_21 = arith.constant 1 : i32
    %c0_i32_22 = arith.constant 0 : i32
    %36 = tpu.memref_slice %arg8[%c1_i32_21, %c0_i32_22] : memref<8x64xf32, #tpu.memory_space<vmem>> -> memref<1x64xf32, #tpu.memory_space<vmem>>
    %37 = tpu.memref_slice %arg10[%c1_i32_19] : memref<3x!tpu.dma_semaphore, #tpu.memory_space<semaphore_mem>> -> memref<1x!tpu.dma_semaphore, #tpu.memory_space<semaphore_mem>>
    %38 = tpu.memref_squeeze %37 : memref<1x!tpu.dma_semaphore, #tpu.memory_space<semaphore_mem>> -> memref<!tpu.dma_semaphore, #tpu.memory_space<semaphore_mem>>
    tpu.enqueue_dma source(%35 : memref<1x64xf32, #tpu.memory_space<any>>) target(%36 : memref<1x64xf32, #tpu.memory_space<vmem>>) target_semaphore(%38 : memref<!tpu.dma_semaphore, #tpu.memory_space<semaphore_mem>>)
    %c2_i32_23 = arith.constant 2 : i32
    %c0_i32_24 = arith.constant 0 : i32
    %39 = tpu.memref_slice %arg4[%30, %c0_i32_24] : memref<100x64xf32, #tpu.memory_space<any>> -> memref<1x64xf32, #tpu.memory_space<any>>
    %c1_i32_25 = arith.constant 1 : i32
    %c0_i32_26 = arith.constant 0 : i32
    %40 = tpu.memref_slice %arg9[%c1_i32_25, %c0_i32_26] : memref<8x64xf32, #tpu.memory_space<vmem>> -> memref<1x64xf32, #tpu.memory_space<vmem>>
    %41 = tpu.memref_slice %arg10[%c2_i32_23] : memref<3x!tpu.dma_semaphore, #tpu.memory_space<semaphore_mem>> -> memref<1x!tpu.dma_semaphore, #tpu.memory_space<semaphore_mem>>
    %42 = tpu.memref_squeeze %41 : memref<1x!tpu.dma_semaphore, #tpu.memory_space<semaphore_mem>> -> memref<!tpu.dma_semaphore, #tpu.memory_space<semaphore_mem>>
    tpu.enqueue_dma source(%39 : memref<1x64xf32, #tpu.memory_space<any>>) target(%40 : memref<1x64xf32, #tpu.memory_space<vmem>>) target_semaphore(%42 : memref<!tpu.dma_semaphore, #tpu.memory_space<semaphore_mem>>)
    %c2_i32_27 = arith.constant 2 : i32
    %43 = arith.addi %0, %c2_i32_27 : i32
    %44 = arith.index_cast %43 : i32 to index
    %45 = memref.load %arg1[%44] : memref<16xi32, #tpu.memory_space<smem>>
    %c2_i32_28 = arith.constant 2 : i32
    %46 = arith.addi %0, %c2_i32_28 : i32
    %47 = arith.index_cast %46 : i32 to index
    %48 = memref.load %arg2[%47] : memref<16xi32, #tpu.memory_space<smem>>
    %c2_i32_29 = arith.constant 2 : i32
    %49 = arith.addi %0, %c2_i32_29 : i32
    %50 = arith.index_cast %49 : i32 to index
    %51 = memref.load %arg3[%50] : memref<16xi32, #tpu.memory_space<smem>>
    %c0_i32_30 = arith.constant 0 : i32
    %c0_i32_31 = arith.constant 0 : i32
    %52 = tpu.memref_slice %arg4[%45, %c0_i32_31] : memref<100x64xf32, #tpu.memory_space<any>> -> memref<1x64xf32, #tpu.memory_space<any>>
    %c2_i32_32 = arith.constant 2 : i32
    %c0_i32_33 = arith.constant 0 : i32
    %53 = tpu.memref_slice %arg7[%c2_i32_32, %c0_i32_33] : memref<8x64xf32, #tpu.memory_space<vmem>> -> memref<1x64xf32, #tpu.memory_space<vmem>>
    %54 = tpu.memref_slice %arg10[%c0_i32_30] : memref<3x!tpu.dma_semaphore, #tpu.memory_space<semaphore_mem>> -> memref<1x!tpu.dma_semaphore, #tpu.memory_space<semaphore_mem>>
    %55 = tpu.memref_squeeze %54 : memref<1x!tpu.dma_semaphore, #tpu.memory_space<semaphore_mem>> -> memref<!tpu.dma_semaphore, #tpu.memory_space<semaphore_mem>>
    tpu.enqueue_dma source(%52 : memref<1x64xf32, #tpu.memory_space<any>>) target(%53 : memref<1x64xf32, #tpu.memory_space<vmem>>) target_semaphore(%55 : memref<!tpu.dma_semaphore, #tpu.memory_space<semaphore_mem>>)
    %c1_i32_34 = arith.constant 1 : i32
    %c0_i32_35 = arith.constant 0 : i32
    %56 = tpu.memref_slice %arg5[%48, %c0_i32_35] : memref<20x64xf32, #tpu.memory_space<any>> -> memref<1x64xf32, #tpu.memory_space<any>>
    %c2_i32_36 = arith.constant 2 : i32
    %c0_i32_37 = arith.constant 0 : i32
    %57 = tpu.memref_slice %arg8[%c2_i32_36, %c0_i32_37] : memref<8x64xf32, #tpu.memory_space<vmem>> -> memref<1x64xf32, #tpu.memory_space<vmem>>
    %58 = tpu.memref_slice %arg10[%c1_i32_34] : memref<3x!tpu.dma_semaphore, #tpu.memory_space<semaphore_mem>> -> memref<1x!tpu.dma_semaphore, #tpu.memory_space<semaphore_mem>>
    %59 = tpu.memref_squeeze %58 : memref<1x!tpu.dma_semaphore, #tpu.memory_space<semaphore_mem>> -> memref<!tpu.dma_semaphore, #tpu.memory_space<semaphore_mem>>
    tpu.enqueue_dma source(%56 : memref<1x64xf32, #tpu.memory_space<any>>) target(%57 : memref<1x64xf32, #tpu.memory_space<vmem>>) target_semaphore(%59 : memref<!tpu.dma_semaphore, #tpu.memory_space<semaphore_mem>>)
    %c2_i32_38 = arith.constant 2 : i32
    %c0_i32_39 = arith.constant 0 : i32
    %60 = tpu.memref_slice %arg4[%51, %c0_i32_39] : memref<100x64xf32, #tpu.memory_space<any>> -> memref<1x64xf32, #tpu.memory_space<any>>
    %c2_i32_40 = arith.constant 2 : i32
    %c0_i32_41 = arith.constant 0 : i32
    %61 = tpu.memref_slice %arg9[%c2_i32_40, %c0_i32_41] : memref<8x64xf32, #tpu.memory_space<vmem>> -> memref<1x64xf32, #tpu.memory_space<vmem>>
    %62 = tpu.memref_slice %arg10[%c2_i32_38] : memref<3x!tpu.dma_semaphore, #tpu.memory_space<semaphore_mem>> -> memref<1x!tpu.dma_semaphore, #tpu.memory_space<semaphore_mem>>
    %63 = tpu.memref_squeeze %62 : memref<1x!tpu.dma_semaphore, #tpu.memory_space<semaphore_mem>> -> memref<!tpu.dma_semaphore, #tpu.memory_space<semaphore_mem>>
    tpu.enqueue_dma source(%60 : memref<1x64xf32, #tpu.memory_space<any>>) target(%61 : memref<1x64xf32, #tpu.memory_space<vmem>>) target_semaphore(%63 : memref<!tpu.dma_semaphore, #tpu.memory_space<semaphore_mem>>)
    %c3_i32 = arith.constant 3 : i32
    %64 = arith.addi %0, %c3_i32 : i32
    %65 = arith.index_cast %64 : i32 to index
    %66 = memref.load %arg1[%65] : memref<16xi32, #tpu.memory_space<smem>>
    %c3_i32_42 = arith.constant 3 : i32
    %67 = arith.addi %0, %c3_i32_42 : i32
    %68 = arith.index_cast %67 : i32 to index
    %69 = memref.load %arg2[%68] : memref<16xi32, #tpu.memory_space<smem>>
    %c3_i32_43 = arith.constant 3 : i32
    %70 = arith.addi %0, %c3_i32_43 : i32
    %71 = arith.index_cast %70 : i32 to index
    %72 = memref.load %arg3[%71] : memref<16xi32, #tpu.memory_space<smem>>
    %c0_i32_44 = arith.constant 0 : i32
    %c0_i32_45 = arith.constant 0 : i32
    %73 = tpu.memref_slice %arg4[%66, %c0_i32_45] : memref<100x64xf32, #tpu.memory_space<any>> -> memref<1x64xf32, #tpu.memory_space<any>>
    %c3_i32_46 = arith.constant 3 : i32
    %c0_i32_47 = arith.constant 0 : i32
    %74 = tpu.memref_slice %arg7[%c3_i32_46, %c0_i32_47] : memref<8x64xf32, #tpu.memory_space<vmem>> -> memref<1x64xf32, #tpu.memory_space<vmem>>
    %75 = tpu.memref_slice %arg10[%c0_i32_44] : memref<3x!tpu.dma_semaphore, #tpu.memory_space<semaphore_mem>> -> memref<1x!tpu.dma_semaphore, #tpu.memory_space<semaphore_mem>>
    %76 = tpu.memref_squeeze %75 : memref<1x!tpu.dma_semaphore, #tpu.memory_space<semaphore_mem>> -> memref<!tpu.dma_semaphore, #tpu.memory_space<semaphore_mem>>
    tpu.enqueue_dma source(%73 : memref<1x64xf32, #tpu.memory_space<any>>) target(%74 : memref<1x64xf32, #tpu.memory_space<vmem>>) target_semaphore(%76 : memref<!tpu.dma_semaphore, #tpu.memory_space<semaphore_mem>>)
    %c1_i32_48 = arith.constant 1 : i32
    %c0_i32_49 = arith.constant 0 : i32
    %77 = tpu.memref_slice %arg5[%69, %c0_i32_49] : memref<20x64xf32, #tpu.memory_space<any>> -> memref<1x64xf32, #tpu.memory_space<any>>
    %c3_i32_50 = arith.constant 3 : i32
    %c0_i32_51 = arith.constant 0 : i32
    %78 = tpu.memref_slice %arg8[%c3_i32_50, %c0_i32_51] : memref<8x64xf32, #tpu.memory_space<vmem>> -> memref<1x64xf32, #tpu.memory_space<vmem>>
    %79 = tpu.memref_slice %arg10[%c1_i32_48] : memref<3x!tpu.dma_semaphore, #tpu.memory_space<semaphore_mem>> -> memref<1x!tpu.dma_semaphore, #tpu.memory_space<semaphore_mem>>
    %80 = tpu.memref_squeeze %79 : memref<1x!tpu.dma_semaphore, #tpu.memory_space<semaphore_mem>> -> memref<!tpu.dma_semaphore, #tpu.memory_space<semaphore_mem>>
    tpu.enqueue_dma source(%77 : memref<1x64xf32, #tpu.memory_space<any>>) target(%78 : memref<1x64xf32, #tpu.memory_space<vmem>>) target_semaphore(%80 : memref<!tpu.dma_semaphore, #tpu.memory_space<semaphore_mem>>)
    %c2_i32_52 = arith.constant 2 : i32
    %c0_i32_53 = arith.constant 0 : i32
    %81 = tpu.memref_slice %arg4[%72, %c0_i32_53] : memref<100x64xf32, #tpu.memory_space<any>> -> memref<1x64xf32, #tpu.memory_space<any>>
    %c3_i32_54 = arith.constant 3 : i32
    %c0_i32_55 = arith.constant 0 : i32
    %82 = tpu.memref_slice %arg9[%c3_i32_54, %c0_i32_55] : memref<8x64xf32, #tpu.memory_space<vmem>> -> memref<1x64xf32, #tpu.memory_space<vmem>>
    %83 = tpu.memref_slice %arg10[%c2_i32_52] : memref<3x!tpu.dma_semaphore, #tpu.memory_space<semaphore_mem>> -> memref<1x!tpu.dma_semaphore, #tpu.memory_space<semaphore_mem>>
    %84 = tpu.memref_squeeze %83 : memref<1x!tpu.dma_semaphore, #tpu.memory_space<semaphore_mem>> -> memref<!tpu.dma_semaphore, #tpu.memory_space<semaphore_mem>>
    tpu.enqueue_dma source(%81 : memref<1x64xf32, #tpu.memory_space<any>>) target(%82 : memref<1x64xf32, #tpu.memory_space<vmem>>) target_semaphore(%84 : memref<!tpu.dma_semaphore, #tpu.memory_space<semaphore_mem>>)
    %c4_i32 = arith.constant 4 : i32
    %85 = arith.addi %0, %c4_i32 : i32
    %86 = arith.index_cast %85 : i32 to index
    %87 = memref.load %arg1[%86] : memref<16xi32, #tpu.memory_space<smem>>
    %c4_i32_56 = arith.constant 4 : i32
    %88 = arith.addi %0, %c4_i32_56 : i32
    %89 = arith.index_cast %88 : i32 to index
    %90 = memref.load %arg2[%89] : memref<16xi32, #tpu.memory_space<smem>>
    %c4_i32_57 = arith.constant 4 : i32
    %91 = arith.addi %0, %c4_i32_57 : i32
    %92 = arith.index_cast %91 : i32 to index
    %93 = memref.load %arg3[%92] : memref<16xi32, #tpu.memory_space<smem>>
    %c0_i32_58 = arith.constant 0 : i32
    %c0_i32_59 = arith.constant 0 : i32
    %94 = tpu.memref_slice %arg4[%87, %c0_i32_59] : memref<100x64xf32, #tpu.memory_space<any>> -> memref<1x64xf32, #tpu.memory_space<any>>
    %c4_i32_60 = arith.constant 4 : i32
    %c0_i32_61 = arith.constant 0 : i32
    %95 = tpu.memref_slice %arg7[%c4_i32_60, %c0_i32_61] : memref<8x64xf32, #tpu.memory_space<vmem>> -> memref<1x64xf32, #tpu.memory_space<vmem>>
    %96 = tpu.memref_slice %arg10[%c0_i32_58] : memref<3x!tpu.dma_semaphore, #tpu.memory_space<semaphore_mem>> -> memref<1x!tpu.dma_semaphore, #tpu.memory_space<semaphore_mem>>
    %97 = tpu.memref_squeeze %96 : memref<1x!tpu.dma_semaphore, #tpu.memory_space<semaphore_mem>> -> memref<!tpu.dma_semaphore, #tpu.memory_space<semaphore_mem>>
    tpu.enqueue_dma source(%94 : memref<1x64xf32, #tpu.memory_space<any>>) target(%95 : memref<1x64xf32, #tpu.memory_space<vmem>>) target_semaphore(%97 : memref<!tpu.dma_semaphore, #tpu.memory_space<semaphore_mem>>)
    %c1_i32_62 = arith.constant 1 : i32
    %c0_i32_63 = arith.constant 0 : i32
    %98 = tpu.memref_slice %arg5[%90, %c0_i32_63] : memref<20x64xf32, #tpu.memory_space<any>> -> memref<1x64xf32, #tpu.memory_space<any>>
    %c4_i32_64 = arith.constant 4 : i32
    %c0_i32_65 = arith.constant 0 : i32
    %99 = tpu.memref_slice %arg8[%c4_i32_64, %c0_i32_65] : memref<8x64xf32, #tpu.memory_space<vmem>> -> memref<1x64xf32, #tpu.memory_space<vmem>>
    %100 = tpu.memref_slice %arg10[%c1_i32_62] : memref<3x!tpu.dma_semaphore, #tpu.memory_space<semaphore_mem>> -> memref<1x!tpu.dma_semaphore, #tpu.memory_space<semaphore_mem>>
    %101 = tpu.memref_squeeze %100 : memref<1x!tpu.dma_semaphore, #tpu.memory_space<semaphore_mem>> -> memref<!tpu.dma_semaphore, #tpu.memory_space<semaphore_mem>>
    tpu.enqueue_dma source(%98 : memref<1x64xf32, #tpu.memory_space<any>>) target(%99 : memref<1x64xf32, #tpu.memory_space<vmem>>) target_semaphore(%101 : memref<!tpu.dma_semaphore, #tpu.memory_space<semaphore_mem>>)
    %c2_i32_66 = arith.constant 2 : i32
    %c0_i32_67 = arith.constant 0 : i32
    %102 = tpu.memref_slice %arg4[%93, %c0_i32_67] : memref<100x64xf32, #tpu.memory_space<any>> -> memref<1x64xf32, #tpu.memory_space<any>>
    %c4_i32_68 = arith.constant 4 : i32
    %c0_i32_69 = arith.constant 0 : i32
    %103 = tpu.memref_slice %arg9[%c4_i32_68, %c0_i32_69] : memref<8x64xf32, #tpu.memory_space<vmem>> -> memref<1x64xf32, #tpu.memory_space<vmem>>
    %104 = tpu.memref_slice %arg10[%c2_i32_66] : memref<3x!tpu.dma_semaphore, #tpu.memory_space<semaphore_mem>> -> memref<1x!tpu.dma_semaphore, #tpu.memory_space<semaphore_mem>>
    %105 = tpu.memref_squeeze %104 : memref<1x!tpu.dma_semaphore, #tpu.memory_space<semaphore_mem>> -> memref<!tpu.dma_semaphore, #tpu.memory_space<semaphore_mem>>
    tpu.enqueue_dma source(%102 : memref<1x64xf32, #tpu.memory_space<any>>) target(%103 : memref<1x64xf32, #tpu.memory_space<vmem>>) target_semaphore(%105 : memref<!tpu.dma_semaphore, #tpu.memory_space<semaphore_mem>>)
    %c5_i32 = arith.constant 5 : i32
    %106 = arith.addi %0, %c5_i32 : i32
    %107 = arith.index_cast %106 : i32 to index
    %108 = memref.load %arg1[%107] : memref<16xi32, #tpu.memory_space<smem>>
    %c5_i32_70 = arith.constant 5 : i32
    %109 = arith.addi %0, %c5_i32_70 : i32
    %110 = arith.index_cast %109 : i32 to index
    %111 = memref.load %arg2[%110] : memref<16xi32, #tpu.memory_space<smem>>
    %c5_i32_71 = arith.constant 5 : i32
    %112 = arith.addi %0, %c5_i32_71 : i32
    %113 = arith.index_cast %112 : i32 to index
    %114 = memref.load %arg3[%113] : memref<16xi32, #tpu.memory_space<smem>>
    %c0_i32_72 = arith.constant 0 : i32
    %c0_i32_73 = arith.constant 0 : i32
    %115 = tpu.memref_slice %arg4[%108, %c0_i32_73] : memref<100x64xf32, #tpu.memory_space<any>> -> memref<1x64xf32, #tpu.memory_space<any>>
    %c5_i32_74 = arith.constant 5 : i32
    %c0_i32_75 = arith.constant 0 : i32
    %116 = tpu.memref_slice %arg7[%c5_i32_74, %c0_i32_75] : memref<8x64xf32, #tpu.memory_space<vmem>> -> memref<1x64xf32, #tpu.memory_space<vmem>>
    %117 = tpu.memref_slice %arg10[%c0_i32_72] : memref<3x!tpu.dma_semaphore, #tpu.memory_space<semaphore_mem>> -> memref<1x!tpu.dma_semaphore, #tpu.memory_space<semaphore_mem>>
    %118 = tpu.memref_squeeze %117 : memref<1x!tpu.dma_semaphore, #tpu.memory_space<semaphore_mem>> -> memref<!tpu.dma_semaphore, #tpu.memory_space<semaphore_mem>>
    tpu.enqueue_dma source(%115 : memref<1x64xf32, #tpu.memory_space<any>>) target(%116 : memref<1x64xf32, #tpu.memory_space<vmem>>) target_semaphore(%118 : memref<!tpu.dma_semaphore, #tpu.memory_space<semaphore_mem>>)
    %c1_i32_76 = arith.constant 1 : i32
    %c0_i32_77 = arith.constant 0 : i32
    %119 = tpu.memref_slice %arg5[%111, %c0_i32_77] : memref<20x64xf32, #tpu.memory_space<any>> -> memref<1x64xf32, #tpu.memory_space<any>>
    %c5_i32_78 = arith.constant 5 : i32
    %c0_i32_79 = arith.constant 0 : i32
    %120 = tpu.memref_slice %arg8[%c5_i32_78, %c0_i32_79] : memref<8x64xf32, #tpu.memory_space<vmem>> -> memref<1x64xf32, #tpu.memory_space<vmem>>
    %121 = tpu.memref_slice %arg10[%c1_i32_76] : memref<3x!tpu.dma_semaphore, #tpu.memory_space<semaphore_mem>> -> memref<1x!tpu.dma_semaphore, #tpu.memory_space<semaphore_mem>>
    %122 = tpu.memref_squeeze %121 : memref<1x!tpu.dma_semaphore, #tpu.memory_space<semaphore_mem>> -> memref<!tpu.dma_semaphore, #tpu.memory_space<semaphore_mem>>
    tpu.enqueue_dma source(%119 : memref<1x64xf32, #tpu.memory_space<any>>) target(%120 : memref<1x64xf32, #tpu.memory_space<vmem>>) target_semaphore(%122 : memref<!tpu.dma_semaphore, #tpu.memory_space<semaphore_mem>>)
    %c2_i32_80 = arith.constant 2 : i32
    %c0_i32_81 = arith.constant 0 : i32
    %123 = tpu.memref_slice %arg4[%114, %c0_i32_81] : memref<100x64xf32, #tpu.memory_space<any>> -> memref<1x64xf32, #tpu.memory_space<any>>
    %c5_i32_82 = arith.constant 5 : i32
    %c0_i32_83 = arith.constant 0 : i32
    %124 = tpu.memref_slice %arg9[%c5_i32_82, %c0_i32_83] : memref<8x64xf32, #tpu.memory_space<vmem>> -> memref<1x64xf32, #tpu.memory_space<vmem>>
    %125 = tpu.memref_slice %arg10[%c2_i32_80] : memref<3x!tpu.dma_semaphore, #tpu.memory_space<semaphore_mem>> -> memref<1x!tpu.dma_semaphore, #tpu.memory_space<semaphore_mem>>
    %126 = tpu.memref_squeeze %125 : memref<1x!tpu.dma_semaphore, #tpu.memory_space<semaphore_mem>> -> memref<!tpu.dma_semaphore, #tpu.memory_space<semaphore_mem>>
    tpu.enqueue_dma source(%123 : memref<1x64xf32, #tpu.memory_space<any>>) target(%124 : memref<1x64xf32, #tpu.memory_space<vmem>>) target_semaphore(%126 : memref<!tpu.dma_semaphore, #tpu.memory_space<semaphore_mem>>)
    %c6_i32 = arith.constant 6 : i32
    %127 = arith.addi %0, %c6_i32 : i32
    %128 = arith.index_cast %127 : i32 to index
    %129 = memref.load %arg1[%128] : memref<16xi32, #tpu.memory_space<smem>>
    %c6_i32_84 = arith.constant 6 : i32
    %130 = arith.addi %0, %c6_i32_84 : i32
    %131 = arith.index_cast %130 : i32 to index
    %132 = memref.load %arg2[%131] : memref<16xi32, #tpu.memory_space<smem>>
    %c6_i32_85 = arith.constant 6 : i32
    %133 = arith.addi %0, %c6_i32_85 : i32
    %134 = arith.index_cast %133 : i32 to index
    %135 = memref.load %arg3[%134] : memref<16xi32, #tpu.memory_space<smem>>
    %c0_i32_86 = arith.constant 0 : i32
    %c0_i32_87 = arith.constant 0 : i32
    %136 = tpu.memref_slice %arg4[%129, %c0_i32_87] : memref<100x64xf32, #tpu.memory_space<any>> -> memref<1x64xf32, #tpu.memory_space<any>>
    %c6_i32_88 = arith.constant 6 : i32
    %c0_i32_89 = arith.constant 0 : i32
    %137 = tpu.memref_slice %arg7[%c6_i32_88, %c0_i32_89] : memref<8x64xf32, #tpu.memory_space<vmem>> -> memref<1x64xf32, #tpu.memory_space<vmem>>
    %138 = tpu.memref_slice %arg10[%c0_i32_86] : memref<3x!tpu.dma_semaphore, #tpu.memory_space<semaphore_mem>> -> memref<1x!tpu.dma_semaphore, #tpu.memory_space<semaphore_mem>>
    %139 = tpu.memref_squeeze %138 : memref<1x!tpu.dma_semaphore, #tpu.memory_space<semaphore_mem>> -> memref<!tpu.dma_semaphore, #tpu.memory_space<semaphore_mem>>
    tpu.enqueue_dma source(%136 : memref<1x64xf32, #tpu.memory_space<any>>) target(%137 : memref<1x64xf32, #tpu.memory_space<vmem>>) target_semaphore(%139 : memref<!tpu.dma_semaphore, #tpu.memory_space<semaphore_mem>>)
    %c1_i32_90 = arith.constant 1 : i32
    %c0_i32_91 = arith.constant 0 : i32
    %140 = tpu.memref_slice %arg5[%132, %c0_i32_91] : memref<20x64xf32, #tpu.memory_space<any>> -> memref<1x64xf32, #tpu.memory_space<any>>
    %c6_i32_92 = arith.constant 6 : i32
    %c0_i32_93 = arith.constant 0 : i32
    %141 = tpu.memref_slice %arg8[%c6_i32_92, %c0_i32_93] : memref<8x64xf32, #tpu.memory_space<vmem>> -> memref<1x64xf32, #tpu.memory_space<vmem>>
    %142 = tpu.memref_slice %arg10[%c1_i32_90] : memref<3x!tpu.dma_semaphore, #tpu.memory_space<semaphore_mem>> -> memref<1x!tpu.dma_semaphore, #tpu.memory_space<semaphore_mem>>
    %143 = tpu.memref_squeeze %142 : memref<1x!tpu.dma_semaphore, #tpu.memory_space<semaphore_mem>> -> memref<!tpu.dma_semaphore, #tpu.memory_space<semaphore_mem>>
    tpu.enqueue_dma source(%140 : memref<1x64xf32, #tpu.memory_space<any>>) target(%141 : memref<1x64xf32, #tpu.memory_space<vmem>>) target_semaphore(%143 : memref<!tpu.dma_semaphore, #tpu.memory_space<semaphore_mem>>)
    %c2_i32_94 = arith.constant 2 : i32
    %c0_i32_95 = arith.constant 0 : i32
    %144 = tpu.memref_slice %arg4[%135, %c0_i32_95] : memref<100x64xf32, #tpu.memory_space<any>> -> memref<1x64xf32, #tpu.memory_space<any>>
    %c6_i32_96 = arith.constant 6 : i32
    %c0_i32_97 = arith.constant 0 : i32
    %145 = tpu.memref_slice %arg9[%c6_i32_96, %c0_i32_97] : memref<8x64xf32, #tpu.memory_space<vmem>> -> memref<1x64xf32, #tpu.memory_space<vmem>>
    %146 = tpu.memref_slice %arg10[%c2_i32_94] : memref<3x!tpu.dma_semaphore, #tpu.memory_space<semaphore_mem>> -> memref<1x!tpu.dma_semaphore, #tpu.memory_space<semaphore_mem>>
    %147 = tpu.memref_squeeze %146 : memref<1x!tpu.dma_semaphore, #tpu.memory_space<semaphore_mem>> -> memref<!tpu.dma_semaphore, #tpu.memory_space<semaphore_mem>>
    tpu.enqueue_dma source(%144 : memref<1x64xf32, #tpu.memory_space<any>>) target(%145 : memref<1x64xf32, #tpu.memory_space<vmem>>) target_semaphore(%147 : memref<!tpu.dma_semaphore, #tpu.memory_space<semaphore_mem>>)
    %c7_i32 = arith.constant 7 : i32
    %148 = arith.addi %0, %c7_i32 : i32
    %149 = arith.index_cast %148 : i32 to index
    %150 = memref.load %arg1[%149] : memref<16xi32, #tpu.memory_space<smem>>
    %c7_i32_98 = arith.constant 7 : i32
    %151 = arith.addi %0, %c7_i32_98 : i32
    %152 = arith.index_cast %151 : i32 to index
    %153 = memref.load %arg2[%152] : memref<16xi32, #tpu.memory_space<smem>>
    %c7_i32_99 = arith.constant 7 : i32
    %154 = arith.addi %0, %c7_i32_99 : i32
    %155 = arith.index_cast %154 : i32 to index
    %156 = memref.load %arg3[%155] : memref<16xi32, #tpu.memory_space<smem>>
    %c0_i32_100 = arith.constant 0 : i32
    %c0_i32_101 = arith.constant 0 : i32
    %157 = tpu.memref_slice %arg4[%150, %c0_i32_101] : memref<100x64xf32, #tpu.memory_space<any>> -> memref<1x64xf32, #tpu.memory_space<any>>
    %c7_i32_102 = arith.constant 7 : i32
    %c0_i32_103 = arith.constant 0 : i32
    %158 = tpu.memref_slice %arg7[%c7_i32_102, %c0_i32_103] : memref<8x64xf32, #tpu.memory_space<vmem>> -> memref<1x64xf32, #tpu.memory_space<vmem>>
    %159 = tpu.memref_slice %arg10[%c0_i32_100] : memref<3x!tpu.dma_semaphore, #tpu.memory_space<semaphore_mem>> -> memref<1x!tpu.dma_semaphore, #tpu.memory_space<semaphore_mem>>
    %160 = tpu.memref_squeeze %159 : memref<1x!tpu.dma_semaphore, #tpu.memory_space<semaphore_mem>> -> memref<!tpu.dma_semaphore, #tpu.memory_space<semaphore_mem>>
    tpu.enqueue_dma source(%157 : memref<1x64xf32, #tpu.memory_space<any>>) target(%158 : memref<1x64xf32, #tpu.memory_space<vmem>>) target_semaphore(%160 : memref<!tpu.dma_semaphore, #tpu.memory_space<semaphore_mem>>)
    %c1_i32_104 = arith.constant 1 : i32
    %c0_i32_105 = arith.constant 0 : i32
    %161 = tpu.memref_slice %arg5[%153, %c0_i32_105] : memref<20x64xf32, #tpu.memory_space<any>> -> memref<1x64xf32, #tpu.memory_space<any>>
    %c7_i32_106 = arith.constant 7 : i32
    %c0_i32_107 = arith.constant 0 : i32
    %162 = tpu.memref_slice %arg8[%c7_i32_106, %c0_i32_107] : memref<8x64xf32, #tpu.memory_space<vmem>> -> memref<1x64xf32, #tpu.memory_space<vmem>>
    %163 = tpu.memref_slice %arg10[%c1_i32_104] : memref<3x!tpu.dma_semaphore, #tpu.memory_space<semaphore_mem>> -> memref<1x!tpu.dma_semaphore, #tpu.memory_space<semaphore_mem>>
    %164 = tpu.memref_squeeze %163 : memref<1x!tpu.dma_semaphore, #tpu.memory_space<semaphore_mem>> -> memref<!tpu.dma_semaphore, #tpu.memory_space<semaphore_mem>>
    tpu.enqueue_dma source(%161 : memref<1x64xf32, #tpu.memory_space<any>>) target(%162 : memref<1x64xf32, #tpu.memory_space<vmem>>) target_semaphore(%164 : memref<!tpu.dma_semaphore, #tpu.memory_space<semaphore_mem>>)
    %c2_i32_108 = arith.constant 2 : i32
    %c0_i32_109 = arith.constant 0 : i32
    %165 = tpu.memref_slice %arg4[%156, %c0_i32_109] : memref<100x64xf32, #tpu.memory_space<any>> -> memref<1x64xf32, #tpu.memory_space<any>>
    %c7_i32_110 = arith.constant 7 : i32
    %c0_i32_111 = arith.constant 0 : i32
    %166 = tpu.memref_slice %arg9[%c7_i32_110, %c0_i32_111] : memref<8x64xf32, #tpu.memory_space<vmem>> -> memref<1x64xf32, #tpu.memory_space<vmem>>
    %167 = tpu.memref_slice %arg10[%c2_i32_108] : memref<3x!tpu.dma_semaphore, #tpu.memory_space<semaphore_mem>> -> memref<1x!tpu.dma_semaphore, #tpu.memory_space<semaphore_mem>>
    %168 = tpu.memref_squeeze %167 : memref<1x!tpu.dma_semaphore, #tpu.memory_space<semaphore_mem>> -> memref<!tpu.dma_semaphore, #tpu.memory_space<semaphore_mem>>
    tpu.enqueue_dma source(%165 : memref<1x64xf32, #tpu.memory_space<any>>) target(%166 : memref<1x64xf32, #tpu.memory_space<vmem>>) target_semaphore(%168 : memref<!tpu.dma_semaphore, #tpu.memory_space<semaphore_mem>>)
    %c0_i32_112 = arith.constant 0 : i32
    %169 = arith.addi %0, %c0_i32_112 : i32
    %170 = arith.index_cast %169 : i32 to index
    %171 = memref.load %arg1[%170] : memref<16xi32, #tpu.memory_space<smem>>
    %c0_i32_113 = arith.constant 0 : i32
    %172 = arith.addi %0, %c0_i32_113 : i32
    %173 = arith.index_cast %172 : i32 to index
    %174 = memref.load %arg2[%173] : memref<16xi32, #tpu.memory_space<smem>>
    %c0_i32_114 = arith.constant 0 : i32
    %175 = arith.addi %0, %c0_i32_114 : i32
    %176 = arith.index_cast %175 : i32 to index
    %177 = memref.load %arg3[%176] : memref<16xi32, #tpu.memory_space<smem>>
    %c0_i32_115 = arith.constant 0 : i32
    %c0_i32_116 = arith.constant 0 : i32
    %178 = tpu.memref_slice %arg4[%171, %c0_i32_116] : memref<100x64xf32, #tpu.memory_space<any>> -> memref<1x64xf32, #tpu.memory_space<any>>
    %c0_i32_117 = arith.constant 0 : i32
    %c0_i32_118 = arith.constant 0 : i32
    %179 = tpu.memref_slice %arg7[%c0_i32_117, %c0_i32_118] : memref<8x64xf32, #tpu.memory_space<vmem>> -> memref<1x64xf32, #tpu.memory_space<vmem>>
    %180 = tpu.memref_slice %arg10[%c0_i32_115] : memref<3x!tpu.dma_semaphore, #tpu.memory_space<semaphore_mem>> -> memref<1x!tpu.dma_semaphore, #tpu.memory_space<semaphore_mem>>
    %181 = tpu.memref_squeeze %180 : memref<1x!tpu.dma_semaphore, #tpu.memory_space<semaphore_mem>> -> memref<!tpu.dma_semaphore, #tpu.memory_space<semaphore_mem>>
    tpu.wait_dma2 semaphore(%181 : memref<!tpu.dma_semaphore, #tpu.memory_space<semaphore_mem>>) src(%178 : memref<1x64xf32, #tpu.memory_space<any>>) dst(%179 : memref<1x64xf32, #tpu.memory_space<vmem>>)
    %c1_i32_119 = arith.constant 1 : i32
    %c0_i32_120 = arith.constant 0 : i32
    %182 = tpu.memref_slice %arg5[%174, %c0_i32_120] : memref<20x64xf32, #tpu.memory_space<any>> -> memref<1x64xf32, #tpu.memory_space<any>>
    %c0_i32_121 = arith.constant 0 : i32
    %c0_i32_122 = arith.constant 0 : i32
    %183 = tpu.memref_slice %arg8[%c0_i32_121, %c0_i32_122] : memref<8x64xf32, #tpu.memory_space<vmem>> -> memref<1x64xf32, #tpu.memory_space<vmem>>
    %184 = tpu.memref_slice %arg10[%c1_i32_119] : memref<3x!tpu.dma_semaphore, #tpu.memory_space<semaphore_mem>> -> memref<1x!tpu.dma_semaphore, #tpu.memory_space<semaphore_mem>>
    %185 = tpu.memref_squeeze %184 : memref<1x!tpu.dma_semaphore, #tpu.memory_space<semaphore_mem>> -> memref<!tpu.dma_semaphore, #tpu.memory_space<semaphore_mem>>
    tpu.wait_dma2 semaphore(%185 : memref<!tpu.dma_semaphore, #tpu.memory_space<semaphore_mem>>) src(%182 : memref<1x64xf32, #tpu.memory_space<any>>) dst(%183 : memref<1x64xf32, #tpu.memory_space<vmem>>)
    %c2_i32_123 = arith.constant 2 : i32
    %c0_i32_124 = arith.constant 0 : i32
    %186 = tpu.memref_slice %arg4[%177, %c0_i32_124] : memref<100x64xf32, #tpu.memory_space<any>> -> memref<1x64xf32, #tpu.memory_space<any>>
    %c0_i32_125 = arith.constant 0 : i32
    %c0_i32_126 = arith.constant 0 : i32
    %187 = tpu.memref_slice %arg9[%c0_i32_125, %c0_i32_126] : memref<8x64xf32, #tpu.memory_space<vmem>> -> memref<1x64xf32, #tpu.memory_space<vmem>>
    %188 = tpu.memref_slice %arg10[%c2_i32_123] : memref<3x!tpu.dma_semaphore, #tpu.memory_space<semaphore_mem>> -> memref<1x!tpu.dma_semaphore, #tpu.memory_space<semaphore_mem>>
    %189 = tpu.memref_squeeze %188 : memref<1x!tpu.dma_semaphore, #tpu.memory_space<semaphore_mem>> -> memref<!tpu.dma_semaphore, #tpu.memory_space<semaphore_mem>>
    tpu.wait_dma2 semaphore(%189 : memref<!tpu.dma_semaphore, #tpu.memory_space<semaphore_mem>>) src(%186 : memref<1x64xf32, #tpu.memory_space<any>>) dst(%187 : memref<1x64xf32, #tpu.memory_space<vmem>>)
    %c1_i32_127 = arith.constant 1 : i32
    %190 = arith.addi %0, %c1_i32_127 : i32
    %191 = arith.index_cast %190 : i32 to index
    %192 = memref.load %arg1[%191] : memref<16xi32, #tpu.memory_space<smem>>
    %c1_i32_128 = arith.constant 1 : i32
    %193 = arith.addi %0, %c1_i32_128 : i32
    %194 = arith.index_cast %193 : i32 to index
    %195 = memref.load %arg2[%194] : memref<16xi32, #tpu.memory_space<smem>>
    %c1_i32_129 = arith.constant 1 : i32
    %196 = arith.addi %0, %c1_i32_129 : i32
    %197 = arith.index_cast %196 : i32 to index
    %198 = memref.load %arg3[%197] : memref<16xi32, #tpu.memory_space<smem>>
    %c0_i32_130 = arith.constant 0 : i32
    %c0_i32_131 = arith.constant 0 : i32
    %199 = tpu.memref_slice %arg4[%192, %c0_i32_131] : memref<100x64xf32, #tpu.memory_space<any>> -> memref<1x64xf32, #tpu.memory_space<any>>
    %c1_i32_132 = arith.constant 1 : i32
    %c0_i32_133 = arith.constant 0 : i32
    %200 = tpu.memref_slice %arg7[%c1_i32_132, %c0_i32_133] : memref<8x64xf32, #tpu.memory_space<vmem>> -> memref<1x64xf32, #tpu.memory_space<vmem>>
    %201 = tpu.memref_slice %arg10[%c0_i32_130] : memref<3x!tpu.dma_semaphore, #tpu.memory_space<semaphore_mem>> -> memref<1x!tpu.dma_semaphore, #tpu.memory_space<semaphore_mem>>
    %202 = tpu.memref_squeeze %201 : memref<1x!tpu.dma_semaphore, #tpu.memory_space<semaphore_mem>> -> memref<!tpu.dma_semaphore, #tpu.memory_space<semaphore_mem>>
    tpu.wait_dma2 semaphore(%202 : memref<!tpu.dma_semaphore, #tpu.memory_space<semaphore_mem>>) src(%199 : memref<1x64xf32, #tpu.memory_space<any>>) dst(%200 : memref<1x64xf32, #tpu.memory_space<vmem>>)
    %c1_i32_134 = arith.constant 1 : i32
    %c0_i32_135 = arith.constant 0 : i32
    %203 = tpu.memref_slice %arg5[%195, %c0_i32_135] : memref<20x64xf32, #tpu.memory_space<any>> -> memref<1x64xf32, #tpu.memory_space<any>>
    %c1_i32_136 = arith.constant 1 : i32
    %c0_i32_137 = arith.constant 0 : i32
    %204 = tpu.memref_slice %arg8[%c1_i32_136, %c0_i32_137] : memref<8x64xf32, #tpu.memory_space<vmem>> -> memref<1x64xf32, #tpu.memory_space<vmem>>
    %205 = tpu.memref_slice %arg10[%c1_i32_134] : memref<3x!tpu.dma_semaphore, #tpu.memory_space<semaphore_mem>> -> memref<1x!tpu.dma_semaphore, #tpu.memory_space<semaphore_mem>>
    %206 = tpu.memref_squeeze %205 : memref<1x!tpu.dma_semaphore, #tpu.memory_space<semaphore_mem>> -> memref<!tpu.dma_semaphore, #tpu.memory_space<semaphore_mem>>
    tpu.wait_dma2 semaphore(%206 : memref<!tpu.dma_semaphore, #tpu.memory_space<semaphore_mem>>) src(%203 : memref<1x64xf32, #tpu.memory_space<any>>) dst(%204 : memref<1x64xf32, #tpu.memory_space<vmem>>)
    %c2_i32_138 = arith.constant 2 : i32
    %c0_i32_139 = arith.constant 0 : i32
    %207 = tpu.memref_slice %arg4[%198, %c0_i32_139] : memref<100x64xf32, #tpu.memory_space<any>> -> memref<1x64xf32, #tpu.memory_space<any>>
    %c1_i32_140 = arith.constant 1 : i32
    %c0_i32_141 = arith.constant 0 : i32
    %208 = tpu.memref_slice %arg9[%c1_i32_140, %c0_i32_141] : memref<8x64xf32, #tpu.memory_space<vmem>> -> memref<1x64xf32, #tpu.memory_space<vmem>>
    %209 = tpu.memref_slice %arg10[%c2_i32_138] : memref<3x!tpu.dma_semaphore, #tpu.memory_space<semaphore_mem>> -> memref<1x!tpu.dma_semaphore, #tpu.memory_space<semaphore_mem>>
    %210 = tpu.memref_squeeze %209 : memref<1x!tpu.dma_semaphore, #tpu.memory_space<semaphore_mem>> -> memref<!tpu.dma_semaphore, #tpu.memory_space<semaphore_mem>>
    tpu.wait_dma2 semaphore(%210 : memref<!tpu.dma_semaphore, #tpu.memory_space<semaphore_mem>>) src(%207 : memref<1x64xf32, #tpu.memory_space<any>>) dst(%208 : memref<1x64xf32, #tpu.memory_space<vmem>>)
    %c2_i32_142 = arith.constant 2 : i32
    %211 = arith.addi %0, %c2_i32_142 : i32
    %212 = arith.index_cast %211 : i32 to index
    %213 = memref.load %arg1[%212] : memref<16xi32, #tpu.memory_space<smem>>
    %c2_i32_143 = arith.constant 2 : i32
    %214 = arith.addi %0, %c2_i32_143 : i32
    %215 = arith.index_cast %214 : i32 to index
    %216 = memref.load %arg2[%215] : memref<16xi32, #tpu.memory_space<smem>>
    %c2_i32_144 = arith.constant 2 : i32
    %217 = arith.addi %0, %c2_i32_144 : i32
    %218 = arith.index_cast %217 : i32 to index
    %219 = memref.load %arg3[%218] : memref<16xi32, #tpu.memory_space<smem>>
    %c0_i32_145 = arith.constant 0 : i32
    %c0_i32_146 = arith.constant 0 : i32
    %220 = tpu.memref_slice %arg4[%213, %c0_i32_146] : memref<100x64xf32, #tpu.memory_space<any>> -> memref<1x64xf32, #tpu.memory_space<any>>
    %c2_i32_147 = arith.constant 2 : i32
    %c0_i32_148 = arith.constant 0 : i32
    %221 = tpu.memref_slice %arg7[%c2_i32_147, %c0_i32_148] : memref<8x64xf32, #tpu.memory_space<vmem>> -> memref<1x64xf32, #tpu.memory_space<vmem>>
    %222 = tpu.memref_slice %arg10[%c0_i32_145] : memref<3x!tpu.dma_semaphore, #tpu.memory_space<semaphore_mem>> -> memref<1x!tpu.dma_semaphore, #tpu.memory_space<semaphore_mem>>
    %223 = tpu.memref_squeeze %222 : memref<1x!tpu.dma_semaphore, #tpu.memory_space<semaphore_mem>> -> memref<!tpu.dma_semaphore, #tpu.memory_space<semaphore_mem>>
    tpu.wait_dma2 semaphore(%223 : memref<!tpu.dma_semaphore, #tpu.memory_space<semaphore_mem>>) src(%220 : memref<1x64xf32, #tpu.memory_space<any>>) dst(%221 : memref<1x64xf32, #tpu.memory_space<vmem>>)
    %c1_i32_149 = arith.constant 1 : i32
    %c0_i32_150 = arith.constant 0 : i32
    %224 = tpu.memref_slice %arg5[%216, %c0_i32_150] : memref<20x64xf32, #tpu.memory_space<any>> -> memref<1x64xf32, #tpu.memory_space<any>>
    %c2_i32_151 = arith.constant 2 : i32
    %c0_i32_152 = arith.constant 0 : i32
    %225 = tpu.memref_slice %arg8[%c2_i32_151, %c0_i32_152] : memref<8x64xf32, #tpu.memory_space<vmem>> -> memref<1x64xf32, #tpu.memory_space<vmem>>
    %226 = tpu.memref_slice %arg10[%c1_i32_149] : memref<3x!tpu.dma_semaphore, #tpu.memory_space<semaphore_mem>> -> memref<1x!tpu.dma_semaphore, #tpu.memory_space<semaphore_mem>>
    %227 = tpu.memref_squeeze %226 : memref<1x!tpu.dma_semaphore, #tpu.memory_space<semaphore_mem>> -> memref<!tpu.dma_semaphore, #tpu.memory_space<semaphore_mem>>
    tpu.wait_dma2 semaphore(%227 : memref<!tpu.dma_semaphore, #tpu.memory_space<semaphore_mem>>) src(%224 : memref<1x64xf32, #tpu.memory_space<any>>) dst(%225 : memref<1x64xf32, #tpu.memory_space<vmem>>)
    %c2_i32_153 = arith.constant 2 : i32
    %c0_i32_154 = arith.constant 0 : i32
    %228 = tpu.memref_slice %arg4[%219, %c0_i32_154] : memref<100x64xf32, #tpu.memory_space<any>> -> memref<1x64xf32, #tpu.memory_space<any>>
    %c2_i32_155 = arith.constant 2 : i32
    %c0_i32_156 = arith.constant 0 : i32
    %229 = tpu.memref_slice %arg9[%c2_i32_155, %c0_i32_156] : memref<8x64xf32, #tpu.memory_space<vmem>> -> memref<1x64xf32, #tpu.memory_space<vmem>>
    %230 = tpu.memref_slice %arg10[%c2_i32_153] : memref<3x!tpu.dma_semaphore, #tpu.memory_space<semaphore_mem>> -> memref<1x!tpu.dma_semaphore, #tpu.memory_space<semaphore_mem>>
    %231 = tpu.memref_squeeze %230 : memref<1x!tpu.dma_semaphore, #tpu.memory_space<semaphore_mem>> -> memref<!tpu.dma_semaphore, #tpu.memory_space<semaphore_mem>>
    tpu.wait_dma2 semaphore(%231 : memref<!tpu.dma_semaphore, #tpu.memory_space<semaphore_mem>>) src(%228 : memref<1x64xf32, #tpu.memory_space<any>>) dst(%229 : memref<1x64xf32, #tpu.memory_space<vmem>>)
    %c3_i32_157 = arith.constant 3 : i32
    %232 = arith.addi %0, %c3_i32_157 : i32
    %233 = arith.index_cast %232 : i32 to index
    %234 = memref.load %arg1[%233] : memref<16xi32, #tpu.memory_space<smem>>
    %c3_i32_158 = arith.constant 3 : i32
    %235 = arith.addi %0, %c3_i32_158 : i32
    %236 = arith.index_cast %235 : i32 to index
    %237 = memref.load %arg2[%236] : memref<16xi32, #tpu.memory_space<smem>>
    %c3_i32_159 = arith.constant 3 : i32
    %238 = arith.addi %0, %c3_i32_159 : i32
    %239 = arith.index_cast %238 : i32 to index
    %240 = memref.load %arg3[%239] : memref<16xi32, #tpu.memory_space<smem>>
    %c0_i32_160 = arith.constant 0 : i32
    %c0_i32_161 = arith.constant 0 : i32
    %241 = tpu.memref_slice %arg4[%234, %c0_i32_161] : memref<100x64xf32, #tpu.memory_space<any>> -> memref<1x64xf32, #tpu.memory_space<any>>
    %c3_i32_162 = arith.constant 3 : i32
    %c0_i32_163 = arith.constant 0 : i32
    %242 = tpu.memref_slice %arg7[%c3_i32_162, %c0_i32_163] : memref<8x64xf32, #tpu.memory_space<vmem>> -> memref<1x64xf32, #tpu.memory_space<vmem>>
    %243 = tpu.memref_slice %arg10[%c0_i32_160] : memref<3x!tpu.dma_semaphore, #tpu.memory_space<semaphore_mem>> -> memref<1x!tpu.dma_semaphore, #tpu.memory_space<semaphore_mem>>
    %244 = tpu.memref_squeeze %243 : memref<1x!tpu.dma_semaphore, #tpu.memory_space<semaphore_mem>> -> memref<!tpu.dma_semaphore, #tpu.memory_space<semaphore_mem>>
    tpu.wait_dma2 semaphore(%244 : memref<!tpu.dma_semaphore, #tpu.memory_space<semaphore_mem>>) src(%241 : memref<1x64xf32, #tpu.memory_space<any>>) dst(%242 : memref<1x64xf32, #tpu.memory_space<vmem>>)
    %c1_i32_164 = arith.constant 1 : i32
    %c0_i32_165 = arith.constant 0 : i32
    %245 = tpu.memref_slice %arg5[%237, %c0_i32_165] : memref<20x64xf32, #tpu.memory_space<any>> -> memref<1x64xf32, #tpu.memory_space<any>>
    %c3_i32_166 = arith.constant 3 : i32
    %c0_i32_167 = arith.constant 0 : i32
    %246 = tpu.memref_slice %arg8[%c3_i32_166, %c0_i32_167] : memref<8x64xf32, #tpu.memory_space<vmem>> -> memref<1x64xf32, #tpu.memory_space<vmem>>
    %247 = tpu.memref_slice %arg10[%c1_i32_164] : memref<3x!tpu.dma_semaphore, #tpu.memory_space<semaphore_mem>> -> memref<1x!tpu.dma_semaphore, #tpu.memory_space<semaphore_mem>>
    %248 = tpu.memref_squeeze %247 : memref<1x!tpu.dma_semaphore, #tpu.memory_space<semaphore_mem>> -> memref<!tpu.dma_semaphore, #tpu.memory_space<semaphore_mem>>
    tpu.wait_dma2 semaphore(%248 : memref<!tpu.dma_semaphore, #tpu.memory_space<semaphore_mem>>) src(%245 : memref<1x64xf32, #tpu.memory_space<any>>) dst(%246 : memref<1x64xf32, #tpu.memory_space<vmem>>)
    %c2_i32_168 = arith.constant 2 : i32
    %c0_i32_169 = arith.constant 0 : i32
    %249 = tpu.memref_slice %arg4[%240, %c0_i32_169] : memref<100x64xf32, #tpu.memory_space<any>> -> memref<1x64xf32, #tpu.memory_space<any>>
    %c3_i32_170 = arith.constant 3 : i32
    %c0_i32_171 = arith.constant 0 : i32
    %250 = tpu.memref_slice %arg9[%c3_i32_170, %c0_i32_171] : memref<8x64xf32, #tpu.memory_space<vmem>> -> memref<1x64xf32, #tpu.memory_space<vmem>>
    %251 = tpu.memref_slice %arg10[%c2_i32_168] : memref<3x!tpu.dma_semaphore, #tpu.memory_space<semaphore_mem>> -> memref<1x!tpu.dma_semaphore, #tpu.memory_space<semaphore_mem>>
    %252 = tpu.memref_squeeze %251 : memref<1x!tpu.dma_semaphore, #tpu.memory_space<semaphore_mem>> -> memref<!tpu.dma_semaphore, #tpu.memory_space<semaphore_mem>>
    tpu.wait_dma2 semaphore(%252 : memref<!tpu.dma_semaphore, #tpu.memory_space<semaphore_mem>>) src(%249 : memref<1x64xf32, #tpu.memory_space<any>>) dst(%250 : memref<1x64xf32, #tpu.memory_space<vmem>>)
    %c4_i32_172 = arith.constant 4 : i32
    %253 = arith.addi %0, %c4_i32_172 : i32
    %254 = arith.index_cast %253 : i32 to index
    %255 = memref.load %arg1[%254] : memref<16xi32, #tpu.memory_space<smem>>
    %c4_i32_173 = arith.constant 4 : i32
    %256 = arith.addi %0, %c4_i32_173 : i32
    %257 = arith.index_cast %256 : i32 to index
    %258 = memref.load %arg2[%257] : memref<16xi32, #tpu.memory_space<smem>>
    %c4_i32_174 = arith.constant 4 : i32
    %259 = arith.addi %0, %c4_i32_174 : i32
    %260 = arith.index_cast %259 : i32 to index
    %261 = memref.load %arg3[%260] : memref<16xi32, #tpu.memory_space<smem>>
    %c0_i32_175 = arith.constant 0 : i32
    %c0_i32_176 = arith.constant 0 : i32
    %262 = tpu.memref_slice %arg4[%255, %c0_i32_176] : memref<100x64xf32, #tpu.memory_space<any>> -> memref<1x64xf32, #tpu.memory_space<any>>
    %c4_i32_177 = arith.constant 4 : i32
    %c0_i32_178 = arith.constant 0 : i32
    %263 = tpu.memref_slice %arg7[%c4_i32_177, %c0_i32_178] : memref<8x64xf32, #tpu.memory_space<vmem>> -> memref<1x64xf32, #tpu.memory_space<vmem>>
    %264 = tpu.memref_slice %arg10[%c0_i32_175] : memref<3x!tpu.dma_semaphore, #tpu.memory_space<semaphore_mem>> -> memref<1x!tpu.dma_semaphore, #tpu.memory_space<semaphore_mem>>
    %265 = tpu.memref_squeeze %264 : memref<1x!tpu.dma_semaphore, #tpu.memory_space<semaphore_mem>> -> memref<!tpu.dma_semaphore, #tpu.memory_space<semaphore_mem>>
    tpu.wait_dma2 semaphore(%265 : memref<!tpu.dma_semaphore, #tpu.memory_space<semaphore_mem>>) src(%262 : memref<1x64xf32, #tpu.memory_space<any>>) dst(%263 : memref<1x64xf32, #tpu.memory_space<vmem>>)
    %c1_i32_179 = arith.constant 1 : i32
    %c0_i32_180 = arith.constant 0 : i32
    %266 = tpu.memref_slice %arg5[%258, %c0_i32_180] : memref<20x64xf32, #tpu.memory_space<any>> -> memref<1x64xf32, #tpu.memory_space<any>>
    %c4_i32_181 = arith.constant 4 : i32
    %c0_i32_182 = arith.constant 0 : i32
    %267 = tpu.memref_slice %arg8[%c4_i32_181, %c0_i32_182] : memref<8x64xf32, #tpu.memory_space<vmem>> -> memref<1x64xf32, #tpu.memory_space<vmem>>
    %268 = tpu.memref_slice %arg10[%c1_i32_179] : memref<3x!tpu.dma_semaphore, #tpu.memory_space<semaphore_mem>> -> memref<1x!tpu.dma_semaphore, #tpu.memory_space<semaphore_mem>>
    %269 = tpu.memref_squeeze %268 : memref<1x!tpu.dma_semaphore, #tpu.memory_space<semaphore_mem>> -> memref<!tpu.dma_semaphore, #tpu.memory_space<semaphore_mem>>
    tpu.wait_dma2 semaphore(%269 : memref<!tpu.dma_semaphore, #tpu.memory_space<semaphore_mem>>) src(%266 : memref<1x64xf32, #tpu.memory_space<any>>) dst(%267 : memref<1x64xf32, #tpu.memory_space<vmem>>)
    %c2_i32_183 = arith.constant 2 : i32
    %c0_i32_184 = arith.constant 0 : i32
    %270 = tpu.memref_slice %arg4[%261, %c0_i32_184] : memref<100x64xf32, #tpu.memory_space<any>> -> memref<1x64xf32, #tpu.memory_space<any>>
    %c4_i32_185 = arith.constant 4 : i32
    %c0_i32_186 = arith.constant 0 : i32
    %271 = tpu.memref_slice %arg9[%c4_i32_185, %c0_i32_186] : memref<8x64xf32, #tpu.memory_space<vmem>> -> memref<1x64xf32, #tpu.memory_space<vmem>>
    %272 = tpu.memref_slice %arg10[%c2_i32_183] : memref<3x!tpu.dma_semaphore, #tpu.memory_space<semaphore_mem>> -> memref<1x!tpu.dma_semaphore, #tpu.memory_space<semaphore_mem>>
    %273 = tpu.memref_squeeze %272 : memref<1x!tpu.dma_semaphore, #tpu.memory_space<semaphore_mem>> -> memref<!tpu.dma_semaphore, #tpu.memory_space<semaphore_mem>>
    tpu.wait_dma2 semaphore(%273 : memref<!tpu.dma_semaphore, #tpu.memory_space<semaphore_mem>>) src(%270 : memref<1x64xf32, #tpu.memory_space<any>>) dst(%271 : memref<1x64xf32, #tpu.memory_space<vmem>>)
    %c5_i32_187 = arith.constant 5 : i32
    %274 = arith.addi %0, %c5_i32_187 : i32
    %275 = arith.index_cast %274 : i32 to index
    %276 = memref.load %arg1[%275] : memref<16xi32, #tpu.memory_space<smem>>
    %c5_i32_188 = arith.constant 5 : i32
    %277 = arith.addi %0, %c5_i32_188 : i32
    %278 = arith.index_cast %277 : i32 to index
    %279 = memref.load %arg2[%278] : memref<16xi32, #tpu.memory_space<smem>>
    %c5_i32_189 = arith.constant 5 : i32
    %280 = arith.addi %0, %c5_i32_189 : i32
    %281 = arith.index_cast %280 : i32 to index
    %282 = memref.load %arg3[%281] : memref<16xi32, #tpu.memory_space<smem>>
    %c0_i32_190 = arith.constant 0 : i32
    %c0_i32_191 = arith.constant 0 : i32
    %283 = tpu.memref_slice %arg4[%276, %c0_i32_191] : memref<100x64xf32, #tpu.memory_space<any>> -> memref<1x64xf32, #tpu.memory_space<any>>
    %c5_i32_192 = arith.constant 5 : i32
    %c0_i32_193 = arith.constant 0 : i32
    %284 = tpu.memref_slice %arg7[%c5_i32_192, %c0_i32_193] : memref<8x64xf32, #tpu.memory_space<vmem>> -> memref<1x64xf32, #tpu.memory_space<vmem>>
    %285 = tpu.memref_slice %arg10[%c0_i32_190] : memref<3x!tpu.dma_semaphore, #tpu.memory_space<semaphore_mem>> -> memref<1x!tpu.dma_semaphore, #tpu.memory_space<semaphore_mem>>
    %286 = tpu.memref_squeeze %285 : memref<1x!tpu.dma_semaphore, #tpu.memory_space<semaphore_mem>> -> memref<!tpu.dma_semaphore, #tpu.memory_space<semaphore_mem>>
    tpu.wait_dma2 semaphore(%286 : memref<!tpu.dma_semaphore, #tpu.memory_space<semaphore_mem>>) src(%283 : memref<1x64xf32, #tpu.memory_space<any>>) dst(%284 : memref<1x64xf32, #tpu.memory_space<vmem>>)
    %c1_i32_194 = arith.constant 1 : i32
    %c0_i32_195 = arith.constant 0 : i32
    %287 = tpu.memref_slice %arg5[%279, %c0_i32_195] : memref<20x64xf32, #tpu.memory_space<any>> -> memref<1x64xf32, #tpu.memory_space<any>>
    %c5_i32_196 = arith.constant 5 : i32
    %c0_i32_197 = arith.constant 0 : i32
    %288 = tpu.memref_slice %arg8[%c5_i32_196, %c0_i32_197] : memref<8x64xf32, #tpu.memory_space<vmem>> -> memref<1x64xf32, #tpu.memory_space<vmem>>
    %289 = tpu.memref_slice %arg10[%c1_i32_194] : memref<3x!tpu.dma_semaphore, #tpu.memory_space<semaphore_mem>> -> memref<1x!tpu.dma_semaphore, #tpu.memory_space<semaphore_mem>>
    %290 = tpu.memref_squeeze %289 : memref<1x!tpu.dma_semaphore, #tpu.memory_space<semaphore_mem>> -> memref<!tpu.dma_semaphore, #tpu.memory_space<semaphore_mem>>
    tpu.wait_dma2 semaphore(%290 : memref<!tpu.dma_semaphore, #tpu.memory_space<semaphore_mem>>) src(%287 : memref<1x64xf32, #tpu.memory_space<any>>) dst(%288 : memref<1x64xf32, #tpu.memory_space<vmem>>)
    %c2_i32_198 = arith.constant 2 : i32
    %c0_i32_199 = arith.constant 0 : i32
    %291 = tpu.memref_slice %arg4[%282, %c0_i32_199] : memref<100x64xf32, #tpu.memory_space<any>> -> memref<1x64xf32, #tpu.memory_space<any>>
    %c5_i32_200 = arith.constant 5 : i32
    %c0_i32_201 = arith.constant 0 : i32
    %292 = tpu.memref_slice %arg9[%c5_i32_200, %c0_i32_201] : memref<8x64xf32, #tpu.memory_space<vmem>> -> memref<1x64xf32, #tpu.memory_space<vmem>>
    %293 = tpu.memref_slice %arg10[%c2_i32_198] : memref<3x!tpu.dma_semaphore, #tpu.memory_space<semaphore_mem>> -> memref<1x!tpu.dma_semaphore, #tpu.memory_space<semaphore_mem>>
    %294 = tpu.memref_squeeze %293 : memref<1x!tpu.dma_semaphore, #tpu.memory_space<semaphore_mem>> -> memref<!tpu.dma_semaphore, #tpu.memory_space<semaphore_mem>>
    tpu.wait_dma2 semaphore(%294 : memref<!tpu.dma_semaphore, #tpu.memory_space<semaphore_mem>>) src(%291 : memref<1x64xf32, #tpu.memory_space<any>>) dst(%292 : memref<1x64xf32, #tpu.memory_space<vmem>>)
    %c6_i32_202 = arith.constant 6 : i32
    %295 = arith.addi %0, %c6_i32_202 : i32
    %296 = arith.index_cast %295 : i32 to index
    %297 = memref.load %arg1[%296] : memref<16xi32, #tpu.memory_space<smem>>
    %c6_i32_203 = arith.constant 6 : i32
    %298 = arith.addi %0, %c6_i32_203 : i32
    %299 = arith.index_cast %298 : i32 to index
    %300 = memref.load %arg2[%299] : memref<16xi32, #tpu.memory_space<smem>>
    %c6_i32_204 = arith.constant 6 : i32
    %301 = arith.addi %0, %c6_i32_204 : i32
    %302 = arith.index_cast %301 : i32 to index
    %303 = memref.load %arg3[%302] : memref<16xi32, #tpu.memory_space<smem>>
    %c0_i32_205 = arith.constant 0 : i32
    %c0_i32_206 = arith.constant 0 : i32
    %304 = tpu.memref_slice %arg4[%297, %c0_i32_206] : memref<100x64xf32, #tpu.memory_space<any>> -> memref<1x64xf32, #tpu.memory_space<any>>
    %c6_i32_207 = arith.constant 6 : i32
    %c0_i32_208 = arith.constant 0 : i32
    %305 = tpu.memref_slice %arg7[%c6_i32_207, %c0_i32_208] : memref<8x64xf32, #tpu.memory_space<vmem>> -> memref<1x64xf32, #tpu.memory_space<vmem>>
    %306 = tpu.memref_slice %arg10[%c0_i32_205] : memref<3x!tpu.dma_semaphore, #tpu.memory_space<semaphore_mem>> -> memref<1x!tpu.dma_semaphore, #tpu.memory_space<semaphore_mem>>
    %307 = tpu.memref_squeeze %306 : memref<1x!tpu.dma_semaphore, #tpu.memory_space<semaphore_mem>> -> memref<!tpu.dma_semaphore, #tpu.memory_space<semaphore_mem>>
    tpu.wait_dma2 semaphore(%307 : memref<!tpu.dma_semaphore, #tpu.memory_space<semaphore_mem>>) src(%304 : memref<1x64xf32, #tpu.memory_space<any>>) dst(%305 : memref<1x64xf32, #tpu.memory_space<vmem>>)
    %c1_i32_209 = arith.constant 1 : i32
    %c0_i32_210 = arith.constant 0 : i32
    %308 = tpu.memref_slice %arg5[%300, %c0_i32_210] : memref<20x64xf32, #tpu.memory_space<any>> -> memref<1x64xf32, #tpu.memory_space<any>>
    %c6_i32_211 = arith.constant 6 : i32
    %c0_i32_212 = arith.constant 0 : i32
    %309 = tpu.memref_slice %arg8[%c6_i32_211, %c0_i32_212] : memref<8x64xf32, #tpu.memory_space<vmem>> -> memref<1x64xf32, #tpu.memory_space<vmem>>
    %310 = tpu.memref_slice %arg10[%c1_i32_209] : memref<3x!tpu.dma_semaphore, #tpu.memory_space<semaphore_mem>> -> memref<1x!tpu.dma_semaphore, #tpu.memory_space<semaphore_mem>>
    %311 = tpu.memref_squeeze %310 : memref<1x!tpu.dma_semaphore, #tpu.memory_space<semaphore_mem>> -> memref<!tpu.dma_semaphore, #tpu.memory_space<semaphore_mem>>
    tpu.wait_dma2 semaphore(%311 : memref<!tpu.dma_semaphore, #tpu.memory_space<semaphore_mem>>) src(%308 : memref<1x64xf32, #tpu.memory_space<any>>) dst(%309 : memref<1x64xf32, #tpu.memory_space<vmem>>)
    %c2_i32_213 = arith.constant 2 : i32
    %c0_i32_214 = arith.constant 0 : i32
    %312 = tpu.memref_slice %arg4[%303, %c0_i32_214] : memref<100x64xf32, #tpu.memory_space<any>> -> memref<1x64xf32, #tpu.memory_space<any>>
    %c6_i32_215 = arith.constant 6 : i32
    %c0_i32_216 = arith.constant 0 : i32
    %313 = tpu.memref_slice %arg9[%c6_i32_215, %c0_i32_216] : memref<8x64xf32, #tpu.memory_space<vmem>> -> memref<1x64xf32, #tpu.memory_space<vmem>>
    %314 = tpu.memref_slice %arg10[%c2_i32_213] : memref<3x!tpu.dma_semaphore, #tpu.memory_space<semaphore_mem>> -> memref<1x!tpu.dma_semaphore, #tpu.memory_space<semaphore_mem>>
    %315 = tpu.memref_squeeze %314 : memref<1x!tpu.dma_semaphore, #tpu.memory_space<semaphore_mem>> -> memref<!tpu.dma_semaphore, #tpu.memory_space<semaphore_mem>>
    tpu.wait_dma2 semaphore(%315 : memref<!tpu.dma_semaphore, #tpu.memory_space<semaphore_mem>>) src(%312 : memref<1x64xf32, #tpu.memory_space<any>>) dst(%313 : memref<1x64xf32, #tpu.memory_space<vmem>>)
    %c7_i32_217 = arith.constant 7 : i32
    %316 = arith.addi %0, %c7_i32_217 : i32
    %317 = arith.index_cast %316 : i32 to index
    %318 = memref.load %arg1[%317] : memref<16xi32, #tpu.memory_space<smem>>
    %c7_i32_218 = arith.constant 7 : i32
    %319 = arith.addi %0, %c7_i32_218 : i32
    %320 = arith.index_cast %319 : i32 to index
    %321 = memref.load %arg2[%320] : memref<16xi32, #tpu.memory_space<smem>>
    %c7_i32_219 = arith.constant 7 : i32
    %322 = arith.addi %0, %c7_i32_219 : i32
    %323 = arith.index_cast %322 : i32 to index
    %324 = memref.load %arg3[%323] : memref<16xi32, #tpu.memory_space<smem>>
    %c0_i32_220 = arith.constant 0 : i32
    %c0_i32_221 = arith.constant 0 : i32
    %325 = tpu.memref_slice %arg4[%318, %c0_i32_221] : memref<100x64xf32, #tpu.memory_space<any>> -> memref<1x64xf32, #tpu.memory_space<any>>
    %c7_i32_222 = arith.constant 7 : i32
    %c0_i32_223 = arith.constant 0 : i32
    %326 = tpu.memref_slice %arg7[%c7_i32_222, %c0_i32_223] : memref<8x64xf32, #tpu.memory_space<vmem>> -> memref<1x64xf32, #tpu.memory_space<vmem>>
    %327 = tpu.memref_slice %arg10[%c0_i32_220] : memref<3x!tpu.dma_semaphore, #tpu.memory_space<semaphore_mem>> -> memref<1x!tpu.dma_semaphore, #tpu.memory_space<semaphore_mem>>
    %328 = tpu.memref_squeeze %327 : memref<1x!tpu.dma_semaphore, #tpu.memory_space<semaphore_mem>> -> memref<!tpu.dma_semaphore, #tpu.memory_space<semaphore_mem>>
    tpu.wait_dma2 semaphore(%328 : memref<!tpu.dma_semaphore, #tpu.memory_space<semaphore_mem>>) src(%325 : memref<1x64xf32, #tpu.memory_space<any>>) dst(%326 : memref<1x64xf32, #tpu.memory_space<vmem>>)
    %c1_i32_224 = arith.constant 1 : i32
    %c0_i32_225 = arith.constant 0 : i32
    %329 = tpu.memref_slice %arg5[%321, %c0_i32_225] : memref<20x64xf32, #tpu.memory_space<any>> -> memref<1x64xf32, #tpu.memory_space<any>>
    %c7_i32_226 = arith.constant 7 : i32
    %c0_i32_227 = arith.constant 0 : i32
    %330 = tpu.memref_slice %arg8[%c7_i32_226, %c0_i32_227] : memref<8x64xf32, #tpu.memory_space<vmem>> -> memref<1x64xf32, #tpu.memory_space<vmem>>
    %331 = tpu.memref_slice %arg10[%c1_i32_224] : memref<3x!tpu.dma_semaphore, #tpu.memory_space<semaphore_mem>> -> memref<1x!tpu.dma_semaphore, #tpu.memory_space<semaphore_mem>>
    %332 = tpu.memref_squeeze %331 : memref<1x!tpu.dma_semaphore, #tpu.memory_space<semaphore_mem>> -> memref<!tpu.dma_semaphore, #tpu.memory_space<semaphore_mem>>
    tpu.wait_dma2 semaphore(%332 : memref<!tpu.dma_semaphore, #tpu.memory_space<semaphore_mem>>) src(%329 : memref<1x64xf32, #tpu.memory_space<any>>) dst(%330 : memref<1x64xf32, #tpu.memory_space<vmem>>)
    %c2_i32_228 = arith.constant 2 : i32
    %c0_i32_229 = arith.constant 0 : i32
    %333 = tpu.memref_slice %arg4[%324, %c0_i32_229] : memref<100x64xf32, #tpu.memory_space<any>> -> memref<1x64xf32, #tpu.memory_space<any>>
    %c7_i32_230 = arith.constant 7 : i32
    %c0_i32_231 = arith.constant 0 : i32
    %334 = tpu.memref_slice %arg9[%c7_i32_230, %c0_i32_231] : memref<8x64xf32, #tpu.memory_space<vmem>> -> memref<1x64xf32, #tpu.memory_space<vmem>>
    %335 = tpu.memref_slice %arg10[%c2_i32_228] : memref<3x!tpu.dma_semaphore, #tpu.memory_space<semaphore_mem>> -> memref<1x!tpu.dma_semaphore, #tpu.memory_space<semaphore_mem>>
    %336 = tpu.memref_squeeze %335 : memref<1x!tpu.dma_semaphore, #tpu.memory_space<semaphore_mem>> -> memref<!tpu.dma_semaphore, #tpu.memory_space<semaphore_mem>>
    tpu.wait_dma2 semaphore(%336 : memref<!tpu.dma_semaphore, #tpu.memory_space<semaphore_mem>>) src(%333 : memref<1x64xf32, #tpu.memory_space<any>>) dst(%334 : memref<1x64xf32, #tpu.memory_space<vmem>>)
    %c0 = arith.constant 0 : index
    %c0_232 = arith.constant 0 : index
    %337 = vector.load %arg7[%c0, %c0_232] : memref<8x64xf32, #tpu.memory_space<vmem>>, vector<8x64xf32>
    %338 = vector.extract_strided_slice %337 {offsets = [0, 0], sizes = [8, 32], strides = [1, 1]} : vector<8x64xf32> to vector<8x32xf32>
    %339 = vector.extract_strided_slice %337 {offsets = [0, 32], sizes = [8, 32], strides = [1, 1]} : vector<8x64xf32> to vector<8x32xf32>
    %c0_233 = arith.constant 0 : index
    %c0_234 = arith.constant 0 : index
    %340 = vector.load %arg8[%c0_233, %c0_234] : memref<8x64xf32, #tpu.memory_space<vmem>>, vector<8x64xf32>
    %341 = vector.extract_strided_slice %340 {offsets = [0, 0], sizes = [8, 32], strides = [1, 1]} : vector<8x64xf32> to vector<8x32xf32>
    %342 = vector.extract_strided_slice %340 {offsets = [0, 32], sizes = [8, 32], strides = [1, 1]} : vector<8x64xf32> to vector<8x32xf32>
    %c0_235 = arith.constant 0 : index
    %c0_236 = arith.constant 0 : index
    %343 = vector.load %arg9[%c0_235, %c0_236] : memref<8x64xf32, #tpu.memory_space<vmem>>, vector<8x64xf32>
    %344 = vector.extract_strided_slice %343 {offsets = [0, 0], sizes = [8, 32], strides = [1, 1]} : vector<8x64xf32> to vector<8x32xf32>
    %345 = vector.extract_strided_slice %343 {offsets = [0, 32], sizes = [8, 32], strides = [1, 1]} : vector<8x64xf32> to vector<8x32xf32>
    %346 = arith.mulf %338, %344 : vector<8x32xf32>
    %347 = arith.mulf %339, %345 : vector<8x32xf32>
    %348 = arith.addf %346, %347 : vector<8x32xf32>
    %349 = arith.mulf %348, %341 : vector<8x32xf32>
    %350 = arith.mulf %338, %345 : vector<8x32xf32>
    %351 = arith.mulf %339, %344 : vector<8x32xf32>
    %352 = arith.subf %350, %351 : vector<8x32xf32>
    %353 = arith.mulf %352, %342 : vector<8x32xf32>
    %354 = arith.addf %349, %353 : vector<8x32xf32>
    %cst = arith.constant dense<0.000000e+00> : vector<8xf32>
    %355 = vector.multi_reduction <add>, %354, %cst [1] : vector<8x32xf32> to vector<8xf32>
    %356 = vector.shape_cast %355 : vector<8xf32> to vector<8x1xf32>
    %c0_237 = arith.constant 0 : index
    %c0_238 = arith.constant 0 : index
    %357 = vector.load %arg6[%c0_237, %c0_238] : memref<8x1xf32, #tpu.memory_space<vmem>>, vector<8x1xf32>
    tpu.vector_store %arg6[%c0_237, %c0_238], %356 {strides = array<i32>} : memref<8x1xf32, #tpu.memory_space<vmem>>, vector<8x1xf32>,
    return
  }
  func.func @transform_2(%arg0: i32, %arg1: memref<16xi32, #tpu.memory_space<smem>>, %arg2: memref<16xi32, #tpu.memory_space<smem>>, %arg3: memref<16xi32, #tpu.memory_space<smem>>) -> (i32, i32) {
    %c0_i32 = arith.constant 0 : i32
    %c0_i32_0 = arith.constant 0 : i32
    return %arg0, %c0_i32 : i32, i32
  }
}

</mosaic_0001>

<bundles_post_ra>
// kernel: tpu_custom_call.1
= control target key start
LH: loop header
LB: loop body
LE: loop exit
PB: predicated region body
PF: predicated region fallthrough
CT: control target
= control target key end

     0   :  { %s1367_s24 = smov [#allocation7]   ;;  %s1368_s25 = smov [#allocation8]   ;;  %s1513_s0 = inlined_call_operand.vmem [shape: s32[16], index: 0, kind: input, shape index: {}]   ;;  %s1514_s3 = inlined_call_operand.vmem [shape: f32[100,64], index: 3, kind: input, shape index: {}]   ;;  %s1515_s4 = inlined_call_operand.vmem [shape: f32[20,64], index: 4, kind: input, shape index: {}]   ;;  %s1516_s5 = inlined_call_operand.vmem [shape: f32[16,1], index: 5, kind: output, shape index: {}]   ;;  %s1517_s1 = inlined_call_operand.vmem [shape: s32[16], index: 1, kind: input, shape index: {}]   ;;  %s1518_s2 = inlined_call_operand.vmem [shape: s32[16], index: 2, kind: input, shape index: {}]  }
   0x1   :  { %s11_s20 = sshll.u32 %s1513_s0, 4  ;;  %s16_s23 = sshll.u32 %s1517_s1, 4  ;;  %s12_s20 = int_to_ptr.vmem [resolvable:$true] %s11_s20  ;;  %s17_s23 = int_to_ptr.vmem [resolvable:$true] %s16_s23 }
   0x2   :  { %14 = dma.vmem_to_smem %s12_s20, 16, %s1367_s24, [#allocation6] }
   0x3   :  { %19 = dma.vmem_to_smem %s17_s23, 16, %s1368_s25, [#allocation6] }
   0x4   :  { %s21_s28 = sshll.u32 %s1518_s2, 4  ;;  %s1369_s29 = smov [#allocation9]   ;;  %s22_s28 = int_to_ptr.vmem [resolvable:$true] %s21_s28 }
   0x5   :  { %24 = dma.vmem_to_smem %s22_s28, 16, %s1369_s29, [#allocation6] }
   0x6   :  { %1313 = dma.done.wait [#allocation6], 48 }
   0x7   :  { %1314 = vsyncadd [#allocation6], 4294967248 }
   0x8   :  { %27 = sfence }
   0x9   :  { %s1411_s0 = smov 0  }
   0xa LB: > { %p1252_p0 = scmp.ge.s32.totalorder %s1365_s0, 2  ;;  %s1365_s0 = sphi %s1411_s0, %s33_s0  }
   0xb   : > { %p65_p1 = scmp.lt.s32.totalorder (!%p1252_p0), %s1365_s0, 1  ;;  %s1419_s1 = sshll.u32 (!%p1252_p0), %s1365_s0, 3 }
   0xc   : > { %58 = sbr.rel (%p1252_p0) target bundleno = 544 (0x220), region = 12  ;;  %s70_s2 = sld [smem:[#allocation7 + %s1419_s1]] (!%p1252_p0) }
   0xd   : > { %s71_s6 = sld [smem:[#allocation8 + %s1419_s1]] (!%p1252_p0) }
   0xe   : > { %s72_s8 = sld [smem:[#allocation9 + %s1419_s1]] (!%p1252_p0) }
  0x11   : > { %s66_s30 = scalar_select %p65_p1, %s1365_s0, 1 }
  0x12   : > { %s73_s14 = scalar_lea.vmem %s1514_s3, %s70_s2 }
  0x13   : > { %s1253_s7 = sshll.u32 %s66_s30, 3  ;;  %v88_v0 = vld [vmem:[%s73_s14] sm:$0x1] }
  0x14   : > { %s1428_s11 = scalar_lea.vmem %s1516_s5, %s1253_s7  ;;  %89 = vst [vmem:[#allocation2] sm:$0x1] %v88_v0 }
  0x15   : > { %107 = vsyncadd [#allocation5], 16  ;;  %s108_s17 = scalar_lea.vmem %s1515_s4, %s71_s6 }
  0x16   : > { %v124_v1 = vld [vmem:[%s108_s17] sm:$0x1] }
  0x17   : > { %125 = vst [vmem:[#allocation3] sm:$0x1] %v124_v1 }
  0x18   : > { %143 = vsyncadd [#allocation5 + $0x1], 16  ;;  %s144_s20 = scalar_lea.vmem %s1514_s3, %s72_s8 }
  0x19   : > { %v160_v2 = vld [vmem:[%s144_s20] sm:$0x1] }
  0x1a   : > { %161 = vst [vmem:[#allocation4] sm:$0x1] %v160_v2 }
  0x1b   : > { %179 = vsyncadd [#allocation5 + $0x2], 16  ;;  %s180_s21 = sadd.s32 1, %s1419_s1 }
  0x1c   : > { %s181_s22 = sld [smem:[#allocation7 + %s180_s21]] }
  0x1d   : > { %s182_s23 = sld [smem:[#allocation8 + %s180_s21]] }
  0x1e   : > { %s183_s24 = sld [smem:[#allocation9 + %s180_s21]] }
  0x22   : > { %s184_s27 = scalar_lea.vmem %s1514_s3, %s181_s22 }
  0x23   : > { %v200_v3 = vld [vmem:[%s184_s27] sm:$0x1] }
  0x24   : > { %201 = vst [vmem:[#allocation2 + $0x1] sm:$0x1] %v200_v3 }
  0x25   : > { %219 = vsyncadd [#allocation5], 16  ;;  %s220_s2 = scalar_lea.vmem %s1515_s4, %s182_s23 }
  0x26   : > { %v236_v4 = vld [vmem:[%s220_s2] sm:$0x1] }
  0x27   : > { %237 = vst [vmem:[#allocation3 + $0x1] sm:$0x1] %v236_v4 }
  0x28   : > { %255 = vsyncadd [#allocation5 + $0x1], 16  ;;  %s256_s7 = scalar_lea.vmem %s1514_s3, %s183_s24 }
  0x29   : > { %v272_v5 = vld [vmem:[%s256_s7] sm:$0x1] }
  0x2a   : > { %273 = vst [vmem:[#allocation4 + $0x1] sm:$0x1] %v272_v5 }
  0x2b   : > { %291 = vsyncadd [#allocation5 + $0x2], 16  ;;  %s292_s8 = sadd.s32 2, %s1419_s1 }
  0x2c   : > { %s293_s9 = sld [smem:[#allocation7 + %s292_s8]] }
  0x2d   : > { %s294_s10 = sld [smem:[#allocation8 + %s292_s8]] }
  0x2e   : > { %s295_s12 = sld [smem:[#allocation9 + %s292_s8]] }
  0x32   : > { %s296_s15 = scalar_lea.vmem %s1514_s3, %s293_s9 }
  0x33   : > { %v312_v6 = vld [vmem:[%s296_s15] sm:$0x1] }
  0x34   : > { %313 = vst [vmem:[#allocation2 + $0x2] sm:$0x1] %v312_v6 }
  0x35   : > { %331 = vsyncadd [#allocation5], 16  ;;  %s332_s18 = scalar_lea.vmem %s1515_s4, %s294_s10 }
  0x36   : > { %v348_v7 = vld [vmem:[%s332_s18] sm:$0x1] }
  0x37   : > { %349 = vst [vmem:[#allocation3 + $0x2] sm:$0x1] %v348_v7 }
  0x38   : > { %367 = vsyncadd [#allocation5 + $0x1], 16  ;;  %s368_s21 = scalar_lea.vmem %s1514_s3, %s295_s12 }
  0x39   : > { %v384_v8 = vld [vmem:[%s368_s21] sm:$0x1] }
  0x3a   : > { %385 = vst [vmem:[#allocation4 + $0x2] sm:$0x1] %v384_v8 }
  0x3b   : > { %403 = vsyncadd [#allocation5 + $0x2], 16  ;;  %s404_s22 = sadd.s32 3, %s1419_s1 }
  0x3c   : > { %s405_s23 = sld [smem:[#allocation7 + %s404_s22]] }
  0x3d   : > { %s406_s24 = sld [smem:[#allocation8 + %s404_s22]] }
  0x3e   : > { %s407_s25 = sld [smem:[#allocation9 + %s404_s22]] }
  0x42   : > { %s408_s28 = scalar_lea.vmem %s1514_s3, %s405_s23 }
  0x43   : > { %v424_v9 = vld [vmem:[%s408_s28] sm:$0x1] }
  0x44   : > { %425 = vst [vmem:[#allocation2 + $0x3] sm:$0x1] %v424_v9 }
  0x45   : > { %443 = vsyncadd [#allocation5], 16  ;;  %s444_s30 = scalar_lea.vmem %s1515_s4, %s406_s24 }
  0x46   : > { %v460_v10 = vld [vmem:[%s444_s30] sm:$0x1] }
  0x47   : > { %461 = vst [vmem:[#allocation3 + $0x3] sm:$0x1] %v460_v10 }
  0x48   : > { %479 = vsyncadd [#allocation5 + $0x1], 16  ;;  %s480_s8 = scalar_lea.vmem %s1514_s3, %s407_s25 }
  0x49   : > { %v496_v11 = vld [vmem:[%s480_s8] sm:$0x1] }
  0x4a   : > { %497 = vst [vmem:[#allocation4 + $0x3] sm:$0x1] %v496_v11 }
  0x4b   : > { %515 = vsyncadd [#allocation5 + $0x2], 16  ;;  %s516_s9 = sadd.s32 4, %s1419_s1 }
  0x4c   : > { %s517_s10 = sld [smem:[#allocation7 + %s516_s9]] }
  0x4d   : > { %s518_s12 = sld [smem:[#allocation8 + %s516_s9]] }
  0x4e   : > { %s519_s13 = sld [smem:[#allocation9 + %s516_s9]] }
  0x52   : > { %s520_s16 = scalar_lea.vmem %s1514_s3, %s517_s10 }
  0x53   : > { %v536_v12 = vld [vmem:[%s520_s16] sm:$0x1] }
  0x54   : > { %537 = vst [vmem:[#allocation2 + $0x4] sm:$0x1] %v536_v12 }
  0x55   : > { %555 = vsyncadd [#allocation5], 16  ;;  %s556_s19 = scalar_lea.vmem %s1515_s4, %s518_s12 }
  0x56   : > { %v572_v13 = vld [vmem:[%s556_s19] sm:$0x1] }
  0x57   : > { %573 = vst [vmem:[#allocation3 + $0x4] sm:$0x1] %v572_v13 }
  0x58   : > { %591 = vsyncadd [#allocation5 + $0x1], 16  ;;  %s592_s22 = scalar_lea.vmem %s1514_s3, %s519_s13 }
  0x59   : > { %v608_v14 = vld [vmem:[%s592_s22] sm:$0x1] }
  0x5a   : > { %609 = vst [vmem:[#allocation4 + $0x4] sm:$0x1] %v608_v14 }
  0x5b   : > { %627 = vsyncadd [#allocation5 + $0x2], 16  ;;  %s628_s23 = sadd.s32 5, %s1419_s1 }
  0x5c   : > { %s629_s24 = sld [smem:[#allocation7 + %s628_s23]] }
  0x5d   : > { %s630_s25 = sld [smem:[#allocation8 + %s628_s23]] }
  0x5e   : > { %s631_s26 = sld [smem:[#allocation9 + %s628_s23]] }
  0x62   : > { %s632_s29 = scalar_lea.vmem %s1514_s3, %s629_s24 }
  0x63   : > { %v648_v15 = vld [vmem:[%s632_s29] sm:$0x1] }
  0x64   : > { %649 = vst [vmem:[#allocation2 + $0x5] sm:$0x1] %v648_v15 }
  0x65   : > { %667 = vsyncadd [#allocation5], 16  ;;  %s668_s6 = scalar_lea.vmem %s1515_s4, %s630_s25 }
  0x66   : > { %v684_v16 = vld [vmem:[%s668_s6] sm:$0x1] }
  0x67   : > { %685 = vst [vmem:[#allocation3 + $0x5] sm:$0x1] %v684_v16 }
  0x68   : > { %703 = vsyncadd [#allocation5 + $0x1], 16  ;;  %s704_s9 = scalar_lea.vmem %s1514_s3, %s631_s26 }
  0x69   : > { %v720_v17 = vld [vmem:[%s704_s9] sm:$0x1] }
  0x6a   : > { %721 = vst [vmem:[#allocation4 + $0x5] sm:$0x1] %v720_v17 }
  0x6b   : > { %739 = vsyncadd [#allocation5 + $0x2], 16  ;;  %s740_s10 = sadd.s32 6, %s1419_s1 }
  0x6c   : > { %s741_s12 = sld [smem:[#allocation7 + %s740_s10]] }
  0x6d   : > { %s742_s13 = sld [smem:[#allocation8 + %s740_s10]] }
  0x6e   : > { %s743_s14 = sld [smem:[#allocation9 + %s740_s10]] }
  0x72   : > { %s744_s17 = scalar_lea.vmem %s1514_s3, %s741_s12 }
  0x73   : > { %v760_v18 = vld [vmem:[%s744_s17] sm:$0x1] }
  0x74   : > { %761 = vst [vmem:[#allocation2 + $0x6] sm:$0x1] %v760_v18 }
  0x75   : > { %779 = vsyncadd [#allocation5], 16  ;;  %s780_s20 = scalar_lea.vmem %s1515_s4, %s742_s13 }
  0x76   : > { %v796_v19 = vld [vmem:[%s780_s20] sm:$0x1] }
  0x77   : > { %797 = vst [vmem:[#allocation3 + $0x6] sm:$0x1] %v796_v19 }
  0x78   : > { %815 = vsyncadd [#allocation5 + $0x1], 16  ;;  %s816_s23 = scalar_lea.vmem %s1514_s3, %s743_s14 }
  0x79   : > { %v832_v20 = vld [vmem:[%s816_s23] sm:$0x1] }
  0x7a   : > { %833 = vst [vmem:[#allocation4 + $0x6] sm:$0x1] %v832_v20 }
  0x7b   : > { %851 = vsyncadd [#allocation5 + $0x2], 16  ;;  %s852_s24 = sadd.s32 7, %s1419_s1 }
  0x7c   : > { %s853_s25 = sld [smem:[#allocation7 + %s852_s24]] }
  0x7d   : > { %s854_s26 = sld [smem:[#allocation8 + %s852_s24]] }
  0x7e   : > { %s855_s27 = sld [smem:[#allocation9 + %s852_s24]] }
  0x82   : > { %s856_s2 = scalar_lea.vmem %s1514_s3, %s853_s25 }
  0x83   : > { %v872_v21 = vld [vmem:[%s856_s2] sm:$0x1] }
  0x84   : > { %873 = vst [vmem:[#allocation2 + $0x7] sm:$0x1] %v872_v21 }
  0x85   : > { %891 = vsyncadd [#allocation5], 16  ;;  %s892_s7 = scalar_lea.vmem %s1515_s4, %s854_s26 }
  0x86   : > { %v908_v22 = vld [vmem:[%s892_s7] sm:$0x1] }
  0x87   : > { %909 = vst [vmem:[#allocation3 + $0x7] sm:$0x1] %v908_v22 }
  0x88   : > { %927 = vsyncadd [#allocation5 + $0x1], 16  ;;  %s928_s1 = scalar_lea.vmem %s1514_s3, %s855_s27 }
  0x89   : > { %v944_v23 = vld [vmem:[%s928_s1] sm:$0x1] }
  0x8a   : > { %945 = vst [vmem:[#allocation4 + $0x7] sm:$0x1] %v944_v23 }
  0x8b   : > { %963 = vsyncadd [#allocation5 + $0x2], 16 }
  0x8c   : > { %1315 = dma.done.wait [#allocation5], 16 }
  0x8d   : > { %1316 = vsyncadd [#allocation5], 4294967280 }
  0x8e   : > { %1317 = dma.done.wait [#allocation5 + $0x1], 16 }
  0x8f   : > { %1318 = vsyncadd [#allocation5 + $0x1], 4294967280 }
  0x90   : > { %1319 = dma.done.wait [#allocation5 + $0x2], 16 }
  0x91   : > { %1320 = vsyncadd [#allocation5 + $0x2], 4294967280 }
  0x92   : > { %1321 = dma.done.wait [#allocation5], 16 }
  0x93   : > { %1322 = vsyncadd [#allocation5], 4294967280 }
  0x94   : > { %1323 = dma.done.wait [#allocation5 + $0x1], 16 }
  0x95   : > { %1324 = vsyncadd [#allocation5 + $0x1], 4294967280 }
  0x96   : > { %1325 = dma.done.wait [#allocation5 + $0x2], 16 }
  0x97   : > { %1326 = vsyncadd [#allocation5 + $0x2], 4294967280 }
  0x98   : > { %1327 = dma.done.wait [#allocation5], 16 }
  0x99   : > { %1328 = vsyncadd [#allocation5], 4294967280 }
  0x9a   : > { %1329 = dma.done.wait [#allocation5 + $0x1], 16 }
  0x9b   : > { %1330 = vsyncadd [#allocation5 + $0x1], 4294967280 }
  0x9c   : > { %1331 = dma.done.wait [#allocation5 + $0x2], 16 }
  0x9d   : > { %1332 = vsyncadd [#allocation5 + $0x2], 4294967280 }
  0x9e   : > { %1333 = dma.done.wait [#allocation5], 16 }
  0x9f   : > { %1334 = vsyncadd [#allocation5], 4294967280 }
  0xa0   : > { %1335 = dma.done.wait [#allocation5 + $0x1], 16 }
  0xa1   : > { %1336 = vsyncadd [#allocation5 + $0x1], 4294967280 }
  0xa2   : > { %1337 = dma.done.wait [#allocation5 + $0x2], 16 }
  0xa3   : > { %1338 = vsyncadd [#allocation5 + $0x2], 4294967280 }
  0xa4   : > { %1339 = dma.done.wait [#allocation5], 16 }
  0xa5   : > { %1340 = vsyncadd [#allocation5], 4294967280 }
  0xa6   : > { %1341 = dma.done.wait [#allocation5 + $0x1], 16 }
  0xa7   : > { %1342 = vsyncadd [#allocation5 + $0x1], 4294967280 }
  0xa8   : > { %1343 = dma.done.wait [#allocation5 + $0x2], 16 }
  0xa9   : > { %1344 = vsyncadd [#allocation5 + $0x2], 4294967280 }
  0xaa   : > { %1345 = dma.done.wait [#allocation5], 16 }
  0xab   : > { %1346 = vsyncadd [#allocation5], 4294967280 }
  0xac   : > { %1347 = dma.done.wait [#allocation5 + $0x1], 16 }
  0xad   : > { %1348 = vsyncadd [#allocation5 + $0x1], 4294967280 }
  0xae   : > { %1349 = dma.done.wait [#allocation5 + $0x2], 16 }
  0xaf   : > { %1350 = vsyncadd [#allocation5 + $0x2], 4294967280 }
  0xb0   : > { %1351 = dma.done.wait [#allocation5], 16 }
  0xb1   : > { %1352 = vsyncadd [#allocation5], 4294967280 }
  0xb2   : > { %1353 = dma.done.wait [#allocation5 + $0x1], 16 }
  0xb3   : > { %1354 = vsyncadd [#allocation5 + $0x1], 4294967280 }
  0xb4   : > { %1355 = dma.done.wait [#allocation5 + $0x2], 16 }
  0xb5   : > { %1356 = vsyncadd [#allocation5 + $0x2], 4294967280 }
  0xb6   : > { %1357 = dma.done.wait [#allocation5], 16 }
  0xb7   : > { %1358 = vsyncadd [#allocation5], 4294967280 }
  0xb8   : > { %1359 = dma.done.wait [#allocation5 + $0x1], 16 }
  0xb9   : > { %1360 = vsyncadd [#allocation5 + $0x1], 4294967280 }
  0xba   : > { %1361 = dma.done.wait [#allocation5 + $0x2], 16 }
  0xbb   : > { %1362 = vsyncadd [#allocation5 + $0x2], 4294967280  ;;  %v1039_v24 = vld [vmem:[#allocation4] sm:$0xff]  ;;  %v1037_v25 = vld [vmem:[#allocation2] sm:$0xff]  ;;  %s1370_s10 = smov 32   ;;  %s1371_s12 = smov 96  }
  0xbc   : > { %1052 = vrot.lane.b32.xlu0 %v1039_v24, %s1370_s10  ;;  %v1040_v26 = vmul.f32 %v1039_v24, %v1037_v25  ;;  %v1038_v27 = vld [vmem:[#allocation3] sm:$0xff]  ;;  %vm1067_vm0 = vcmask 261120   ;;  %vm1071_vm1 = vcmask 7168  }
  0xbd   : > { %1062 = vrot.lane.b32.xlu2 %v1038_v27, %s1371_s12 }
  0xbe   : > { %1042 = vrot.lane.b32.xlu1 %v1040_v26, %s1371_s12 }
  0xc4   : > { %1048 = vrot.lane.b32.xlu0 %v1039_v24, %s1371_s12 }
 0x117   : > { %v1063_v35 = vpop.permute.xlu2 %1062 }
 0x12e   : > { %v1053_v28 = vpop.permute.xlu0 %1052 }
 0x12f   : > { %v1055_v29 = vmul.f32 %v1053_v28, %v1037_v25 }
 0x130   : > { %v1043_v30 = vpop.permute.xlu1 %1042 }
 0x131   : > { %1057 = vrot.lane.b32.xlu1 %v1055_v29, %s1371_s12  ;;  %v1045_v33 = vadd.f32 %v1043_v30, %v1040_v26 }
 0x133   : > { %v1046_v37 = vmul.f32 %v1045_v33, %v1038_v27 }
 0x136   : > { %v1049_v31 = vpop.permute.xlu0 %1048 }
 0x137   : > { %v1051_v32 = vmul.f32 %v1049_v31, %v1037_v25 }
 0x1a3   : > { %v1058_v34 = vpop.permute.xlu1 %1057 }
 0x1a4   : > { %v1060_v36 = vsub.f32 %v1051_v32, %v1058_v34 }
 0x1a6   : > { %v1065_v38 = vmul.f32 %v1063_v35, %v1060_v36 }
 0x1a8   : > { %v1066_v39 = vadd.f32 %v1065_v38, %v1046_v37 }
 0x1aa   : > { %v1068_v40 = vsel %vm1067_vm0, %v1066_v39, 0.0 }
 0x1ab   : > { %1069 = vadd.xlane.f32.xlu2 %v1068_v40 }
 0x21e   : > { %v1070_v41 = vpop.xlane.xlu2 %1069 }
 0x21f   : > { %1072 = vst.msk [vmem:[%s1428_s11] sm:$0xff] %vm1071_vm1, %v1070_v41 }
 0x220 PF: > { %s33_s0 = sadd.s32 1, %s1365_s0  }
 0x221   : > { %p30_p2 = scmp.ge.s32.totalorder %s33_s0, 3  }
 0x223   :  { %32 = sbr.rel (!%p30_p2) target bundleno = 10 (0xa), region = 904 }
 0x228   :  { %1092 = vsyncmov [#allocation5] }
 0x22b   :  { %s1093_s13 = vpop.sfrf %1092 }
 0x22c   :  { %p1257_p3 = scmp.ne.s32.totalorder %s1093_s13, 0 }
 0x22e   :  { %1097 = shalt.err (%p1257_p3)  }
 0x22f   :  { %1099 = vsyncmov [#allocation5 + $0x1] }
 0x232   :  { %s1100_s14 = vpop.sfrf %1099 }
 0x233   :  { %p1258_p4 = scmp.ne.s32.totalorder %s1100_s14, 0 }
 0x235   :  { %1104 = shalt.err (%p1258_p4)  }
 0x236   :  { %1106 = vsyncmov [#allocation5 + $0x2] }
 0x239   :  { %s1107_s15 = vpop.sfrf %1106 }
 0x23a   :  { %p1259_p5 = scmp.ne.s32.totalorder %s1107_s15, 0 }
 0x23c   :  { %1111 = shalt.err (%p1259_p5)  }

</bundles_post_ra>
